<compile_context>
chip_gen: v5e
topology: v5e:2x2
jax: 0.10.0
libtpu: 0.0.40
codegen_flags: <defaults>
</compile_context>

<pallas_src>
from functools import partial

import numpy as np
import jax
import jax.numpy as jnp
from jax import lax
from jax.experimental import pallas as pl
from jax.experimental.pallas import tpu as pltpu


LANE = 128  # pad feature dims to the TPU lane width


# ----------------------------------------------------------------------------
# Pallas kernels
# ----------------------------------------------------------------------------
def _full_spec(shape):
    return pl.BlockSpec(shape, lambda *_: (0,) * len(shape))


def _score_kernel(adj_ref, x_ref, wpack_ref, b_ref, o_ref, *,
                  alpha_sc2, sigmoid, eps):
    """Fused score generators: GIN(out_dim=1) + Linear(out_dim=1) + mean + sigmoid.

    Both score weight vectors live in lane-dense columns 0/1 of one (Dp, Dp)
    packed matrix so the MXU does full-width passes; the GIN head is
    reassociated as A@(xW) + (1+eps)(xW).
    """
    x = x_ref[...].astype(jnp.bfloat16)                                   # (N, Dp)
    s = jnp.dot(x, wpack_ref[...], preferred_element_type=jnp.float32)    # (N, Dp)
    agg = jnp.dot(adj_ref[...], s.astype(jnp.bfloat16),
                  preferred_element_type=jnp.float32)                     # (N, Dp)
    b = b_ref[...]                                                        # (1, Dp)
    # scoreGenrator (GIN, encoding => ReLU)
    scores = jnp.maximum(agg[:, 0:1] + (1.0 + eps) * s[:, 0:1] + b[:, 0:1], 0.0)
    if alpha_sc2 != 0.0:
        # scoreGenrator2 (MLP num_layers=1 => Linear); mean(dim=1) is identity (out_dim=1)
        scores = scores + alpha_sc2 * (s[:, 1:2] + b[:, 1:2])
    if sigmoid:
        scores = jax.nn.sigmoid(scores)
    else:
        smin = jnp.min(scores)
        smax = jnp.max(scores)
        scores = (scores - smin) * (1.0 / jnp.maximum(smax - smin, 1e-12))
    o_ref[...] = scores


def _fused_kernel(*refs, num_layers, alpha_l, eps, with_noise):
    """use_x construction + encoder GIN stack + encoder_to_decoder + re-mask +
    decoder GIN + masked SCE loss (single SMEM scalar output).

    Inputs : adj(bf16), x_pad(f32), src_idx(i32,(N,1)), noise_f/token_f/scale_f/
             mask_f (f32,(N,1)), mask_token(f32,(1,Dp)),
             [enc_w(bf16), enc_b(f32)] * num_layers, e2d_w(bf16),
             dec_w(bf16), dec_b(f32)
    Output : SMEM (1,) f32 = mean over mask nodes of (1 - cos)^alpha_l
    """
    (adj_ref, x_ref, src_ref, noise_ref, token_ref,
     scale_ref, mask_ref, mtok_ref) = refs[:8]
    w_refs = refs[8:8 + 2 * num_layers + 3]
    out_ref = refs[8 + 2 * num_layers + 3]

    n = adj_ref.shape[0]
    adj = adj_ref[...]                                         # (N, N) bf16
    x = x_ref[...]                                             # (N, Dp) f32
    token_f = token_ref[...]                                   # (N, 1) f32
    scale_f = scale_ref[...]                                   # (N, 1) f32
    mask_f = mask_ref[...]                                     # (N, 1) f32
    mask_token = mtok_ref[...]                                 # (1, Dp) f32

    # ---- build use_x in VMEM (no (N,Dp) scatters, no extra HBM input) ----
    if with_noise:
        src = src_ref[...]                                     # (N, 1) i32
        noise_f = noise_ref[...]                               # (N, 1) f32
        col = lax.broadcasted_iota(jnp.int32, (n, n), 1)
        onehot = (col == src).astype(jnp.bfloat16)             # row i -> 1 at src[i]
        gathered = jnp.dot(onehot, x.astype(jnp.bfloat16),
                           preferred_element_type=jnp.float32)
        base = x + noise_f * (gathered - x)                    # noise rows replaced
    else:
        base = x
    # token rows -> 0 + mask_token; keep rows scaled by their score
    use_x = (base * (1.0 - token_f) + token_f * mask_token) * scale_f

    # ---- encoder (GIN stack, encoding => ReLU; h resident in bf16) ----
    hb = use_x.astype(jnp.bfloat16)
    idx = 0
    for _ in range(num_layers):
        w = w_refs[idx][...]                                   # (Dp, Dp) bf16
        b = w_refs[idx + 1][...]                               # (1, Dp) f32
        idx += 2
        agg = jnp.dot(adj, hb, preferred_element_type=jnp.float32) + (1.0 + eps) * hb
        h = jnp.dot(agg.astype(jnp.bfloat16), w,
                    preferred_element_type=jnp.float32) + b
        hb = jnp.maximum(h, 0.0).astype(jnp.bfloat16)

    # ---- encoder_to_decoder (Linear, no bias) ----
    e2d_w = w_refs[idx][...]
    idx += 1
    rep = jnp.dot(hb, e2d_w, preferred_element_type=jnp.float32)

    # ---- re-mask (decoder_type == 'gin'): rep[mask_nodes] = 0 ----
    rep = rep * (1.0 - mask_f)

    # ---- decoder (GIN, decoding => no activation) ----
    dec_w = w_refs[idx][...]
    dec_b = w_refs[idx + 1][...]
    agg = jnp.dot(adj, rep.astype(jnp.bfloat16),
                  preferred_element_type=jnp.float32) + (1.0 + eps) * rep
    recon = jnp.dot(agg.astype(jnp.bfloat16), dec_w,
                    preferred_element_type=jnp.float32) + dec_b

    # ---- masked SCE loss (single scalar, division done in-kernel) ----
    inv_r = lax.rsqrt(jnp.maximum(jnp.sum(recon * recon, axis=-1, keepdims=True), 1e-24))
    inv_i = lax.rsqrt(jnp.maximum(jnp.sum(x * x, axis=-1, keepdims=True), 1e-24))
    cos = jnp.sum((recon * inv_r) * (x * inv_i), axis=-1, keepdims=True)
    cos = jnp.clip(cos, -1.0, 1.0)
    base_l = 1.0 - cos
    if float(alpha_l) == int(alpha_l):
        per_row = lax.integer_pow(base_l, int(alpha_l))
    else:
        per_row = base_l ** alpha_l
    num = jnp.sum(per_row * mask_f)
    den = jnp.sum(mask_f)
    out_ref[0] = num / jnp.maximum(den, 1.0)


# ----------------------------------------------------------------------------
# Kernel wrappers
# ----------------------------------------------------------------------------
def score_forward(adj_bf, x_pad, wpack, sc_b, *, alpha_sc2, sigmoid, eps=0.0):
    n = x_pad.shape[0]
    out = pl.pallas_call(
        partial(_score_kernel, alpha_sc2=float(alpha_sc2), sigmoid=bool(sigmoid), eps=eps),
        out_shape=jax.ShapeDtypeStruct((n, 1), jnp.float32),
        in_specs=[_full_spec(adj_bf.shape), _full_spec(x_pad.shape),
                  _full_spec(wpack.shape), _full_spec(sc_b.shape)],
        out_specs=_full_spec((n, 1)),
    )(adj_bf, x_pad, wpack, sc_b)
    return out[:, 0]                                           # (N,)


def fused_encode_decode_loss(adj_bf, x_pad, src_idx, noise_f, token_f, scale_f, mask_f,
                             mask_token, enc_w, enc_b, e2d_w, dec_w, dec_b, *,
                             alpha_l, with_noise, eps=0.0):
    num_layers = len(enc_w)
    wlist = []
    for w, b in zip(enc_w, enc_b):
        wlist += [w, b]
    wlist += [e2d_w, dec_w, dec_b]
    inputs = [adj_bf, x_pad, src_idx, noise_f, token_f, scale_f, mask_f, mask_token] + wlist
    out = pl.pallas_call(
        partial(_fused_kernel, num_layers=num_layers, alpha_l=float(alpha_l),
                eps=eps, with_noise=bool(with_noise)),
        out_shape=jax.ShapeDtypeStruct((1,), jnp.float32),
        in_specs=[_full_spec(a.shape) for a in inputs],
        out_specs=pl.BlockSpec(memory_space=pltpu.MemorySpace.SMEM),
    )(*inputs)
    return out[0]


# ----------------------------------------------------------------------------
# Plain-JAX glue (index bookkeeping only — no (N,Dp) scatters)
# ----------------------------------------------------------------------------
def get_mask_rate(mask_rate, epoch, max_epoch, mode):
    lambda0 = 0.05
    if mode == 'linear':
        return mask_rate * epoch / max_epoch
    if mode == 'root':
        return mask_rate * np.sqrt(epoch / max_epoch)
    if mode == 'geometric':
        return mask_rate * np.power(2, np.log2(lambda0) - np.log2(lambda0) * epoch / max_epoch)
    if mode == 'None':
        return mask_rate
    raise Exception('curMode error!')


def build_mask_vectors(n, mask_rate, scores, key, epoch, max_epoch, cur_mode,
                       start_learning_epoch, alpha, replace_rate):
    """Produces (N,1) per-node descriptors consumed by the fused kernel.
    Single-graph batch (batch == zeros) => topk reduces to a global argsort."""
    k_uni, k_perm, k_pmask, k_noise = jax.random.split(key, 4)

    if epoch >= start_learning_epoch:
        tmp_rate = get_mask_rate(mask_rate, epoch, max_epoch, cur_mode)
        k1 = int(np.ceil(tmp_rate * n))
        throw_first = jnp.argsort(-scores)[:k1]
        tmp_scores = jax.random.uniform(k_uni, (n,), dtype=jnp.float32)
        tmp_scores = tmp_scores.at[throw_first].add(alpha)
        k2 = int(np.ceil((1.0 - mask_rate) * n))
        keep_nodes = jnp.argsort(tmp_scores)[:k2]                 # topk of -tmp_scores
        is_keep = jnp.zeros((n,), jnp.int32).at[keep_nodes].set(1)
        mask_nodes = jnp.argsort(is_keep, stable=True)[: n - k2]  # nodes not kept
        num_mask = n - k2
    else:
        perm = jax.random.permutation(k_perm, n)
        num_mask = int(mask_rate * n)
        mask_nodes = perm[:num_mask]
        keep_nodes = perm[num_mask:]

    src_idx = jnp.arange(n, dtype=jnp.int32)
    noise_v = jnp.zeros((n,), jnp.float32)
    with_noise = False
    if replace_rate > 0:
        num_noise = int(replace_rate * num_mask)
        num_token = int((1.0 - replace_rate) * num_mask)
        perm_mask = jax.random.permutation(k_pmask, num_mask)
        token_nodes = mask_nodes[perm_mask[:num_token]]
        noise_nodes = mask_nodes[perm_mask[num_mask - num_noise:]]
        noise_src = jax.random.permutation(k_noise, n)[:num_noise].astype(jnp.int32)
        src_idx = src_idx.at[noise_nodes].set(noise_src)
        noise_v = noise_v.at[noise_nodes].set(1.0)
        with_noise = num_noise > 0
    else:
        token_nodes = mask_nodes

    token_f = jnp.zeros((n,), jnp.float32).at[token_nodes].set(1.0)
    mask_f = jnp.zeros((n,), jnp.float32).at[mask_nodes].set(1.0)
    if epoch >= start_learning_epoch:
        keep_f = jnp.zeros((n,), jnp.float32).at[keep_nodes].set(1.0)
        scale_f = keep_f * scores + (1.0 - keep_f)                # keep rows scaled by score
    else:
        scale_f = jnp.ones((n,), jnp.float32)

    return (src_idx[:, None], noise_v[:, None], token_f[:, None],
            scale_f[:, None], mask_f[:, None], with_noise)


# ----------------------------------------------------------------------------
# Parameters
# ----------------------------------------------------------------------------
def init_params(key, in_dim, num_hidden, num_layers):
    ks = jax.random.split(key, 16)
    p = {}
    s = 0.1
    p['sc1_w'] = s * jax.random.normal(ks[0], (in_dim, 1), jnp.float32)   # scoreGenrator (GIN)
    p['sc1_b'] = jnp.zeros((1, 1), jnp.float32)
    p['sc2_w'] = s * jax.random.normal(ks[1], (in_dim, 1), jnp.float32)   # scoreGenrator2 (MLP)
    p['sc2_b'] = jnp.zeros((1, 1), jnp.float32)
    p['enc_w'], p['enc_b'] = [], []
    d_in = in_dim
    for li in range(num_layers):
        p['enc_w'].append(s * jax.random.normal(ks[2 + li], (d_in, num_hidden), jnp.float32))
        p['enc_b'].append(jnp.zeros((1, num_hidden), jnp.float32))
        d_in = num_hidden
    p['e2d_w'] = s * jax.random.normal(ks[10], (num_hidden, num_hidden), jnp.float32)
    p['dec_w'] = s * jax.random.normal(ks[11], (num_hidden, in_dim), jnp.float32)
    p['dec_b'] = jnp.zeros((1, in_dim), jnp.float32)
    p['enc_mask_token'] = jnp.zeros((1, in_dim), jnp.float32)
    return p


def _pad2(a, rows, cols):
    out = jnp.zeros((rows, cols), a.dtype)
    return out.at[:a.shape[0], :a.shape[1]].set(a)


def pack_params(p, in_dim, dp=LANE):
    """Zero-pad feature dims to the 128-lane width and pre-cast MXU operands to bf16."""
    pp = {}
    wpack = jnp.zeros((dp, dp), jnp.float32)
    wpack = wpack.at[:in_dim, 0:1].set(p['sc1_w'])
    wpack = wpack.at[:in_dim, 1:2].set(p['sc2_w'])
    pp['sc_wpack'] = wpack.astype(jnp.bfloat16)
    sc_b = jnp.zeros((1, dp), jnp.float32)
    sc_b = sc_b.at[0, 0].set(p['sc1_b'][0, 0]).at[0, 1].set(p['sc2_b'][0, 0])
    pp['sc_b'] = sc_b
    pp['enc_w'] = [_pad2(w, dp, dp).astype(jnp.bfloat16) for w in p['enc_w']]
    pp['enc_b'] = [_pad2(b, 1, dp) for b in p['enc_b']]
    pp['e2d_w'] = _pad2(p['e2d_w'], dp, dp).astype(jnp.bfloat16)
    pp['dec_w'] = _pad2(p['dec_w'], dp, dp).astype(jnp.bfloat16)
    pp['dec_b'] = _pad2(p['dec_b'], 1, dp)
    pp['enc_mask_token'] = _pad2(p['enc_mask_token'], 1, dp)
    return pp


# ----------------------------------------------------------------------------
# Forward
# ----------------------------------------------------------------------------
def premodel_forward(pp, x, adj, key, *, mask_rate=0.3, replace_rate=0.1,
                     alpha=0.1, alpha_sc2=0.0, alpha_l=2.0, sc_sigmoid='True',
                     epoch=5, max_epoch=10, cur_mode='linear', start_learning_epoch=3):
    n, in_dim = x.shape
    dp = pp['enc_w'][0].shape[0]
    x_pad = jnp.zeros((n, dp), jnp.float32).at[:, :in_dim].set(x)   # lane-dense features
    adj_bf = adj.astype(jnp.bfloat16)                               # exact for small int multiplicities

    # ---- fused score generators (Pallas kernel 1) ----
    scores = score_forward(adj_bf, x_pad, pp['sc_wpack'], pp['sc_b'],
                           alpha_sc2=alpha_sc2, sigmoid=(sc_sigmoid == 'True'))

    # ---- structured masking (index bookkeeping only; mask applied in-kernel) ----
    src_idx, noise_f, token_f, scale_f, mask_f, with_noise = build_mask_vectors(
        n, mask_rate, scores, key, epoch, max_epoch, cur_mode,
        start_learning_epoch, alpha, replace_rate)

    # ---- fused use_x build -> encoder -> e2d -> re-mask -> decoder -> masked SCE ----
    # drop_edge_rate == 0 => original adjacency; concat_hidden == False
    loss = fused_encode_decode_loss(
        adj_bf, x_pad, src_idx, noise_f, token_f, scale_f, mask_f,
        pp['enc_mask_token'], pp['enc_w'], pp['enc_b'], pp['e2d_w'],
        pp['dec_w'], pp['dec_b'], alpha_l=alpha_l, with_noise=with_noise)
    return loss


# ----------------------------------------------------------------------------
# Driver
# ----------------------------------------------------------------------------
if __name__ == "__main__":
    N, E = 64, 256            # nodes / edges (single graph; batch = zeros)
    in_dim, num_hidden = 32, 32
    num_layers, nhead = 2, 4  # num_hidden % nhead == 0

    root = jax.random.PRNGKey(0)
    k_x, k_e, k_p, k_mask = jax.random.split(root, 4)

    x = jax.random.normal(k_x, (N, in_dim), jnp.float32)
    src = jax.random.randint(k_e, (E,), 0, N)
    dst = jax.random.randint(jax.random.fold_in(k_e, 1), (E,), 0, N)
    edge_index = jnp.stack([src, dst])                              # (2, E), PyG convention
    # dense adjacency: A[dst, src] = multiplicity  (sum aggregation of x[src] into dst)
    adj = jnp.zeros((N, N), jnp.float32).at[edge_index[1], edge_index[0]].add(1.0)

    params = init_params(k_p, in_dim, num_hidden, num_layers)
    pp = pack_params(params, in_dim)

    fwd = jax.jit(premodel_forward,
                  static_argnames=('mask_rate', 'replace_rate', 'alpha', 'alpha_sc2',
                                   'alpha_l', 'sc_sigmoid', 'epoch', 'max_epoch',
                                   'cur_mode', 'start_learning_epoch'))

    loss = fwd(pp, x, adj, k_mask,
               mask_rate=0.3, replace_rate=0.1, alpha=0.1,
               alpha_sc2=0.0, alpha_l=2.0, sc_sigmoid='True',
               epoch=5, max_epoch=10, cur_mode='linear',
               start_learning_epoch=3)
    loss = jax.block_until_ready(loss)
    assert np.isfinite(float(loss))
    print("KERNEL_OK")
</pallas_src>

<mosaic_0001>
module attributes {stable_mosaic.version = 11 : i64} {
  func.func @_score_kernel(%arg0: memref<64x64xbf16, #tpu.memory_space<vmem>>, %arg1: memref<64x128xf32, #tpu.memory_space<vmem>>, %arg2: memref<128x128xbf16, #tpu.memory_space<vmem>>, %arg3: memref<1x128xf32, #tpu.memory_space<vmem>>, %arg4: memref<64x1xf32, #tpu.memory_space<vmem>>) attributes {dimension_semantics = [], scalar_prefetch = 0 : i64, scratch_operands = 0 : i64, tpu.core_type = #tpu.core_type<tc>} {
    %c0 = arith.constant 0 : index
    %c0_0 = arith.constant 0 : index
    %0 = vector.load %arg1[%c0, %c0_0] : memref<64x128xf32, #tpu.memory_space<vmem>>, vector<64x128xf32>
    %1 = arith.truncf %0 : vector<64x128xf32> to vector<64x128xbf16>
    %c0_1 = arith.constant 0 : index
    %c0_2 = arith.constant 0 : index
    %2 = vector.load %arg2[%c0_1, %c0_2] : memref<128x128xbf16, #tpu.memory_space<vmem>>, vector<128x128xbf16>
    %cst = arith.constant dense<0.000000e+00> : vector<64x128xf32>
    %3 = tpu.matmul %1, %2, %cst {dimension_numbers = #tpu.dot_dimension_numbers<[1], [0], [0], [1], [0, 0, 1, 1], [], []>} : vector<64x128xbf16>, vector<128x128xbf16>, vector<64x128xf32> -> vector<64x128xf32>
    %c0_3 = arith.constant 0 : index
    %c0_4 = arith.constant 0 : index
    %4 = vector.load %arg0[%c0_3, %c0_4] : memref<64x64xbf16, #tpu.memory_space<vmem>>, vector<64x64xbf16>
    %5 = arith.truncf %3 : vector<64x128xf32> to vector<64x128xbf16>
    %cst_5 = arith.constant dense<0.000000e+00> : vector<64x128xf32>
    %6 = tpu.matmul %4, %5, %cst_5 {dimension_numbers = #tpu.dot_dimension_numbers<[1], [0], [0], [1], [0, 0, 1, 1], [], []>} : vector<64x64xbf16>, vector<64x128xbf16>, vector<64x128xf32> -> vector<64x128xf32>
    %c0_6 = arith.constant 0 : index
    %c0_7 = arith.constant 0 : index
    %7 = vector.load %arg3[%c0_6, %c0_7] : memref<1x128xf32, #tpu.memory_space<vmem>>, vector<1x128xf32>
    %8 = vector.extract_strided_slice %6 {offsets = [0, 0], sizes = [64, 1], strides = [1, 1]} : vector<64x128xf32> to vector<64x1xf32>
    %9 = vector.extract_strided_slice %3 {offsets = [0, 0], sizes = [64, 1], strides = [1, 1]} : vector<64x128xf32> to vector<64x1xf32>
    %cst_8 = arith.constant 1.000000e+00 : f32
    %10 = vector.broadcast %cst_8 : f32 to vector<64x1xf32>
    %11 = arith.mulf %10, %9 : vector<64x1xf32>
    %12 = arith.addf %8, %11 : vector<64x1xf32>
    %13 = vector.extract_strided_slice %7 {offsets = [0, 0], sizes = [1, 1], strides = [1, 1]} : vector<1x128xf32> to vector<1x1xf32>
    %14 = vector.broadcast %13 : vector<1x1xf32> to vector<64x1xf32>
    %15 = arith.addf %12, %14 : vector<64x1xf32>
    %cst_9 = arith.constant 0.000000e+00 : f32
    %16 = vector.broadcast %cst_9 : f32 to vector<64x1xf32>
    %17 = arith.maximumf %15, %16 : vector<64x1xf32>
    %18 = arith.negf %17 : vector<64x1xf32>
    %19 = math.exp %18 : vector<64x1xf32>
    %cst_10 = arith.constant 1.000000e+00 : f32
    %20 = vector.broadcast %cst_10 : f32 to vector<64x1xf32>
    %21 = arith.addf %20, %19 : vector<64x1xf32>
    %22 = arith.divf %20, %21 : vector<64x1xf32>
    %c0_11 = arith.constant 0 : index
    %c0_12 = arith.constant 0 : index
    %23 = vector.load %arg4[%c0_11, %c0_12] : memref<64x1xf32, #tpu.memory_space<vmem>>, vector<64x1xf32>
    tpu.vector_store %arg4[%c0_11, %c0_12], %22 {strides = array<i32>} : memref<64x1xf32, #tpu.memory_space<vmem>>, vector<64x1xf32>,
    return
  }
}

module attributes {stable_mosaic.version = 11 : i64} {
  func.func @_fused_kernel(%arg0: memref<64x64xbf16, #tpu.memory_space<vmem>>, %arg1: memref<64x128xf32, #tpu.memory_space<vmem>>, %arg2: memref<64x1xi32, #tpu.memory_space<vmem>>, %arg3: memref<64x1xf32, #tpu.memory_space<vmem>>, %arg4: memref<64x1xf32, #tpu.memory_space<vmem>>, %arg5: memref<64x1xf32, #tpu.memory_space<vmem>>, %arg6: memref<64x1xf32, #tpu.memory_space<vmem>>, %arg7: memref<1x128xf32, #tpu.memory_space<vmem>>, %arg8: memref<128x128xbf16, #tpu.memory_space<vmem>>, %arg9: memref<1x128xf32, #tpu.memory_space<vmem>>, %arg10: memref<128x128xbf16, #tpu.memory_space<vmem>>, %arg11: memref<1x128xf32, #tpu.memory_space<vmem>>, %arg12: memref<128x128xbf16, #tpu.memory_space<vmem>>, %arg13: memref<128x128xbf16, #tpu.memory_space<vmem>>, %arg14: memref<1x128xf32, #tpu.memory_space<vmem>>, %arg15: memref<1xf32, #tpu.memory_space<smem>>) attributes {dimension_semantics = [], scalar_prefetch = 0 : i64, scratch_operands = 0 : i64, tpu.core_type = #tpu.core_type<tc>} {
    %c0 = arith.constant 0 : index
    %c0_0 = arith.constant 0 : index
    %0 = vector.load %arg0[%c0, %c0_0] : memref<64x64xbf16, #tpu.memory_space<vmem>>, vector<64x64xbf16>
    %c0_1 = arith.constant 0 : index
    %c0_2 = arith.constant 0 : index
    %1 = vector.load %arg1[%c0_1, %c0_2] : memref<64x128xf32, #tpu.memory_space<vmem>>, vector<64x128xf32>
    %c0_3 = arith.constant 0 : index
    %c0_4 = arith.constant 0 : index
    %2 = vector.load %arg4[%c0_3, %c0_4] : memref<64x1xf32, #tpu.memory_space<vmem>>, vector<64x1xf32>
    %c0_5 = arith.constant 0 : index
    %c0_6 = arith.constant 0 : index
    %3 = vector.load %arg5[%c0_5, %c0_6] : memref<64x1xf32, #tpu.memory_space<vmem>>, vector<64x1xf32>
    %c0_7 = arith.constant 0 : index
    %c0_8 = arith.constant 0 : index
    %4 = vector.load %arg6[%c0_7, %c0_8] : memref<64x1xf32, #tpu.memory_space<vmem>>, vector<64x1xf32>
    %c0_9 = arith.constant 0 : index
    %c0_10 = arith.constant 0 : index
    %5 = vector.load %arg7[%c0_9, %c0_10] : memref<1x128xf32, #tpu.memory_space<vmem>>, vector<1x128xf32>
    %c0_11 = arith.constant 0 : index
    %c0_12 = arith.constant 0 : index
    %6 = vector.load %arg2[%c0_11, %c0_12] : memref<64x1xi32, #tpu.memory_space<vmem>>, vector<64x1xi32>
    %c0_13 = arith.constant 0 : index
    %c0_14 = arith.constant 0 : index
    %7 = vector.load %arg3[%c0_13, %c0_14] : memref<64x1xf32, #tpu.memory_space<vmem>>, vector<64x1xf32>
    %8 = tpu.iota {dimensions = array<i32: 1>} : vector<64x64xi32>
    %9 = vector.broadcast %6 : vector<64x1xi32> to vector<64x64xi32>
    %10 = arith.cmpi eq, %8, %9 : vector<64x64xi32>
    %11 = arith.extui %10 : vector<64x64xi1> to vector<64x64xi32>
    %12 = arith.sitofp %11 : vector<64x64xi32> to vector<64x64xf32>
    %13 = arith.truncf %12 : vector<64x64xf32> to vector<64x64xbf16>
    %14 = arith.truncf %1 : vector<64x128xf32> to vector<64x128xbf16>
    %cst = arith.constant dense<0.000000e+00> : vector<64x128xf32>
    %15 = tpu.matmul %13, %14, %cst {dimension_numbers = #tpu.dot_dimension_numbers<[1], [0], [0], [1], [0, 0, 1, 1], [], []>} : vector<64x64xbf16>, vector<64x128xbf16>, vector<64x128xf32> -> vector<64x128xf32>
    %16 = arith.subf %15, %1 : vector<64x128xf32>
    %17 = vector.broadcast %7 : vector<64x1xf32> to vector<64x128xf32>
    %18 = arith.mulf %17, %16 : vector<64x128xf32>
    %19 = arith.addf %1, %18 : vector<64x128xf32>
    %cst_15 = arith.constant 1.000000e+00 : f32
    %20 = vector.broadcast %cst_15 : f32 to vector<64x1xf32>
    %21 = arith.subf %20, %2 : vector<64x1xf32>
    %22 = vector.broadcast %21 : vector<64x1xf32> to vector<64x128xf32>
    %23 = arith.mulf %19, %22 : vector<64x128xf32>
    %24 = vector.broadcast %2 : vector<64x1xf32> to vector<64x128xf32>
    %25 = vector.broadcast %5 : vector<1x128xf32> to vector<64x128xf32>
    %26 = arith.mulf %24, %25 : vector<64x128xf32>
    %27 = arith.addf %23, %26 : vector<64x128xf32>
    %28 = vector.broadcast %3 : vector<64x1xf32> to vector<64x128xf32>
    %29 = arith.mulf %27, %28 : vector<64x128xf32>
    %30 = arith.truncf %29 : vector<64x128xf32> to vector<64x128xbf16>
    %c0_16 = arith.constant 0 : index
    %c0_17 = arith.constant 0 : index
    %31 = vector.load %arg8[%c0_16, %c0_17] : memref<128x128xbf16, #tpu.memory_space<vmem>>, vector<128x128xbf16>
    %c0_18 = arith.constant 0 : index
    %c0_19 = arith.constant 0 : index
    %32 = vector.load %arg9[%c0_18, %c0_19] : memref<1x128xf32, #tpu.memory_space<vmem>>, vector<1x128xf32>
    %cst_20 = arith.constant dense<0.000000e+00> : vector<64x128xf32>
    %33 = tpu.matmul %0, %30, %cst_20 {dimension_numbers = #tpu.dot_dimension_numbers<[1], [0], [0], [1], [0, 0, 1, 1], [], []>} : vector<64x64xbf16>, vector<64x128xbf16>, vector<64x128xf32> -> vector<64x128xf32>
    %cst_21 = arith.constant 1.000000e+00 : bf16
    %34 = vector.broadcast %cst_21 : bf16 to vector<64x128xbf16>
    %35 = arith.mulf %34, %30 : vector<64x128xbf16>
    %36 = arith.extf %35 : vector<64x128xbf16> to vector<64x128xf32>
    %37 = arith.addf %33, %36 : vector<64x128xf32>
    %38 = arith.truncf %37 : vector<64x128xf32> to vector<64x128xbf16>
    %cst_22 = arith.constant dense<0.000000e+00> : vector<64x128xf32>
    %39 = tpu.matmul %38, %31, %cst_22 {dimension_numbers = #tpu.dot_dimension_numbers<[1], [0], [0], [1], [0, 0, 1, 1], [], []>} : vector<64x128xbf16>, vector<128x128xbf16>, vector<64x128xf32> -> vector<64x128xf32>
    %40 = vector.broadcast %32 : vector<1x128xf32> to vector<64x128xf32>
    %41 = arith.addf %39, %40 : vector<64x128xf32>
    %cst_23 = arith.constant 0.000000e+00 : f32
    %42 = vector.broadcast %cst_23 : f32 to vector<64x128xf32>
    %43 = arith.maximumf %41, %42 : vector<64x128xf32>
    %44 = arith.truncf %43 : vector<64x128xf32> to vector<64x128xbf16>
    %c0_24 = arith.constant 0 : index
    %c0_25 = arith.constant 0 : index
    %45 = vector.load %arg10[%c0_24, %c0_25] : memref<128x128xbf16, #tpu.memory_space<vmem>>, vector<128x128xbf16>
    %c0_26 = arith.constant 0 : index
    %c0_27 = arith.constant 0 : index
    %46 = vector.load %arg11[%c0_26, %c0_27] : memref<1x128xf32, #tpu.memory_space<vmem>>, vector<1x128xf32>
    %cst_28 = arith.constant dense<0.000000e+00> : vector<64x128xf32>
    %47 = tpu.matmul %0, %44, %cst_28 {dimension_numbers = #tpu.dot_dimension_numbers<[1], [0], [0], [1], [0, 0, 1, 1], [], []>} : vector<64x64xbf16>, vector<64x128xbf16>, vector<64x128xf32> -> vector<64x128xf32>
    %cst_29 = arith.constant 1.000000e+00 : bf16
    %48 = vector.broadcast %cst_29 : bf16 to vector<64x128xbf16>
    %49 = arith.mulf %48, %44 : vector<64x128xbf16>
    %50 = arith.extf %49 : vector<64x128xbf16> to vector<64x128xf32>
    %51 = arith.addf %47, %50 : vector<64x128xf32>
    %52 = arith.truncf %51 : vector<64x128xf32> to vector<64x128xbf16>
    %cst_30 = arith.constant dense<0.000000e+00> : vector<64x128xf32>
    %53 = tpu.matmul %52, %45, %cst_30 {dimension_numbers = #tpu.dot_dimension_numbers<[1], [0], [0], [1], [0, 0, 1, 1], [], []>} : vector<64x128xbf16>, vector<128x128xbf16>, vector<64x128xf32> -> vector<64x128xf32>
    %54 = vector.broadcast %46 : vector<1x128xf32> to vector<64x128xf32>
    %55 = arith.addf %53, %54 : vector<64x128xf32>
    %cst_31 = arith.constant 0.000000e+00 : f32
    %56 = vector.broadcast %cst_31 : f32 to vector<64x128xf32>
    %57 = arith.maximumf %55, %56 : vector<64x128xf32>
    %58 = arith.truncf %57 : vector<64x128xf32> to vector<64x128xbf16>
    %c0_32 = arith.constant 0 : index
    %c0_33 = arith.constant 0 : index
    %59 = vector.load %arg12[%c0_32, %c0_33] : memref<128x128xbf16, #tpu.memory_space<vmem>>, vector<128x128xbf16>
    %cst_34 = arith.constant dense<0.000000e+00> : vector<64x128xf32>
    %60 = tpu.matmul %58, %59, %cst_34 {dimension_numbers = #tpu.dot_dimension_numbers<[1], [0], [0], [1], [0, 0, 1, 1], [], []>} : vector<64x128xbf16>, vector<128x128xbf16>, vector<64x128xf32> -> vector<64x128xf32>
    %cst_35 = arith.constant 1.000000e+00 : f32
    %61 = vector.broadcast %cst_35 : f32 to vector<64x1xf32>
    %62 = arith.subf %61, %4 : vector<64x1xf32>
    %63 = vector.broadcast %62 : vector<64x1xf32> to vector<64x128xf32>
    %64 = arith.mulf %60, %63 : vector<64x128xf32>
    %c0_36 = arith.constant 0 : index
    %c0_37 = arith.constant 0 : index
    %65 = vector.load %arg13[%c0_36, %c0_37] : memref<128x128xbf16, #tpu.memory_space<vmem>>, vector<128x128xbf16>
    %c0_38 = arith.constant 0 : index
    %c0_39 = arith.constant 0 : index
    %66 = vector.load %arg14[%c0_38, %c0_39] : memref<1x128xf32, #tpu.memory_space<vmem>>, vector<1x128xf32>
    %67 = arith.truncf %64 : vector<64x128xf32> to vector<64x128xbf16>
    %cst_40 = arith.constant dense<0.000000e+00> : vector<64x128xf32>
    %68 = tpu.matmul %0, %67, %cst_40 {dimension_numbers = #tpu.dot_dimension_numbers<[1], [0], [0], [1], [0, 0, 1, 1], [], []>} : vector<64x64xbf16>, vector<64x128xbf16>, vector<64x128xf32> -> vector<64x128xf32>
    %cst_41 = arith.constant 1.000000e+00 : f32
    %69 = vector.broadcast %cst_41 : f32 to vector<64x128xf32>
    %70 = arith.mulf %69, %64 : vector<64x128xf32>
    %71 = arith.addf %68, %70 : vector<64x128xf32>
    %72 = arith.truncf %71 : vector<64x128xf32> to vector<64x128xbf16>
    %cst_42 = arith.constant dense<0.000000e+00> : vector<64x128xf32>
    %73 = tpu.matmul %72, %65, %cst_42 {dimension_numbers = #tpu.dot_dimension_numbers<[1], [0], [0], [1], [0, 0, 1, 1], [], []>} : vector<64x128xbf16>, vector<128x128xbf16>, vector<64x128xf32> -> vector<64x128xf32>
    %74 = vector.broadcast %66 : vector<1x128xf32> to vector<64x128xf32>
    %75 = arith.addf %73, %74 : vector<64x128xf32>
    %76 = arith.mulf %75, %75 : vector<64x128xf32>
    %cst_43 = arith.constant dense<0.000000e+00> : vector<64xf32>
    %77 = vector.multi_reduction <add>, %76, %cst_43 [1] : vector<64x128xf32> to vector<64xf32>
    %78 = vector.shape_cast %77 : vector<64xf32> to vector<64x1xf32>
    %cst_44 = arith.constant 1.000000e-24 : f32
    %79 = vector.broadcast %cst_44 : f32 to vector<64x1xf32>
    %80 = arith.maximumf %78, %79 : vector<64x1xf32>
    %81 = math.rsqrt %80 : vector<64x1xf32>
    %82 = arith.mulf %1, %1 : vector<64x128xf32>
    %cst_45 = arith.constant dense<0.000000e+00> : vector<64xf32>
    %83 = vector.multi_reduction <add>, %82, %cst_45 [1] : vector<64x128xf32> to vector<64xf32>
    %84 = vector.shape_cast %83 : vector<64xf32> to vector<64x1xf32>
    %cst_46 = arith.constant 1.000000e-24 : f32
    %85 = vector.broadcast %cst_46 : f32 to vector<64x1xf32>
    %86 = arith.maximumf %84, %85 : vector<64x1xf32>
    %87 = math.rsqrt %86 : vector<64x1xf32>
    %88 = vector.broadcast %81 : vector<64x1xf32> to vector<64x128xf32>
    %89 = arith.mulf %75, %88 : vector<64x128xf32>
    %90 = vector.broadcast %87 : vector<64x1xf32> to vector<64x128xf32>
    %91 = arith.mulf %1, %90 : vector<64x128xf32>
    %92 = arith.mulf %89, %91 : vector<64x128xf32>
    %cst_47 = arith.constant dense<0.000000e+00> : vector<64xf32>
    %93 = vector.multi_reduction <add>, %92, %cst_47 [1] : vector<64x128xf32> to vector<64xf32>
    %94 = vector.shape_cast %93 : vector<64xf32> to vector<64x1xf32>
    %cst_48 = arith.constant -1.000000e+00 : f32
    %cst_49 = arith.constant 1.000000e+00 : f32
    %95 = vector.broadcast %cst_48 : f32 to vector<64x1xf32>
    %96 = arith.maximumf %95, %94 : vector<64x1xf32>
    %97 = vector.broadcast %cst_49 : f32 to vector<64x1xf32>
    %98 = arith.minimumf %97, %96 : vector<64x1xf32>
    %cst_50 = arith.constant 1.000000e+00 : f32
    %99 = vector.broadcast %cst_50 : f32 to vector<64x1xf32>
    %100 = arith.subf %99, %98 : vector<64x1xf32>
    %101 = arith.mulf %100, %100 : vector<64x1xf32>
    %102 = arith.mulf %101, %4 : vector<64x1xf32>
    %103 = vector.shape_cast %102 : vector<64x1xf32> to vector<1x64x1xf32>
    %cst_51 = arith.constant dense<0.000000e+00> : vector<1xf32>
    %104 = vector.multi_reduction <add>, %103, %cst_51 [1, 2] : vector<1x64x1xf32> to vector<1xf32>
    %105 = vector.shape_cast %104 : vector<1xf32> to vector<1x1x1xf32>
    %106 = vector.extract %105[0, 0, 0] : f32 from vector<1x1x1xf32>
    %107 = vector.shape_cast %4 : vector<64x1xf32> to vector<1x64x1xf32>
    %cst_52 = arith.constant dense<0.000000e+00> : vector<1xf32>
    %108 = vector.multi_reduction <add>, %107, %cst_52 [1, 2] : vector<1x64x1xf32> to vector<1xf32>
    %109 = vector.shape_cast %108 : vector<1xf32> to vector<1x1x1xf32>
    %110 = vector.extract %109[0, 0, 0] : f32 from vector<1x1x1xf32>
    %cst_53 = arith.constant 1.000000e+00 : f32
    %111 = arith.maximumf %110, %cst_53 : f32
    %112 = arith.divf %106, %111 : f32
    %c0_54 = arith.constant 0 : index
    %113 = memref.load %arg15[%c0_54] : memref<1xf32, #tpu.memory_space<smem>>
    memref.store %112, %arg15[%c0_54] : memref<1xf32, #tpu.memory_space<smem>>
    return
  }
}

</mosaic_0001>

<bundles_post_ra>
// kernel: neg.1
= control target key start
LH: loop header
LB: loop body
LE: loop exit
PB: predicated region body
PF: predicated region fallthrough
CT: control target
= control target key end

     0   :  { %s24_s0 = inlined_call_operand.vmem [shape: f32[64], index: 0, kind: input, shape index: {}]   ;;  %s25_s1 = inlined_call_operand.vmem [shape: f32[64], index: 1, kind: output, shape index: {}]  }
   0x1   :  { %v2_v0 = vld [vmem:[%s24_s0] sm:$0x1] }
   0x2   :  { %v5_v1 = vxor.u32 2147483648, %v2_v0 }
   0x4   :  { %7 = vst [vmem:[%s25_s1] sm:$0x1] %v5_v1 }

// kernel: premodel_forward.2
= control target key start
LH: loop header
LB: loop body
LE: loop exit
PB: predicated region body
PF: predicated region fallthrough
CT: control target
= control target key end

     0   :  { %vm155_vm0 = vcmask 523264   ;;  %vm377_vm5 = vcmask 7168   ;;  %s656_s2 = inlined_call_operand.vmem [shape: bf16[128,128], index: 2, kind: input, shape index: {}]   ;;  %s657_s1 = inlined_call_operand.vmem [shape: f32[64,128], index: 1, kind: input, shape index: {}]   ;;  %s658_s3 = inlined_call_operand.vmem [shape: f32[1,128], index: 3, kind: input, shape index: {}]   ;;  %s659_s0 = inlined_call_operand.vmem [shape: bf16[64,64], index: 0, kind: input, shape index: {}]   ;;  %s660_s4 = inlined_call_operand.vmem [shape: f32[64,1], index: 4, kind: output, shape index: {}]  }
   0x1   :  { %v457_v0 = vld [vmem:[%s656_s2 + $0x38] sm:$0xff]  ;;  %v456_v1 = vld [vmem:[%s656_s2 + $0x30] sm:$0xff]  ;;  %v455_v2 = vld [vmem:[%s656_s2 + $0x28] sm:$0xff] }
   0x2   :  { %462 = vmatpush.bf16.msra.mxu2 %v457_v0  ;;  %94 = vmatpush.bf16.msra.mxu0 %v457_v0  ;;  %v454_v3 = vld [vmem:[%s656_s2 + $0x20] sm:$0xff]  ;;  %v453_v4 = vld [vmem:[%s656_s2 + $0x18] sm:$0xff]  ;;  %v452_v5 = vld [vmem:[%s656_s2 + $0x10] sm:$0xff] }
   0x3   :  { %v451_v6 = vld [vmem:[%s656_s2 + $0x8] sm:$0xff]  ;;  %v450_v7 = vld [vmem:[%s656_s2] sm:$0xff]  ;;  %v24_v14 = vld [vmem:[%s657_s1 + $0x30] sm:$0xff] }
   0x4   :  { %v22_v8 = vld [vmem:[%s657_s1 + $0x20] sm:$0xff]  ;;  %v23_v9 = vld [vmem:[%s657_s1 + $0x28] sm:$0xff]  ;;  %v25_v15 = vld [vmem:[%s657_s1 + $0x38] sm:$0xff] }
   0x5   :  { %v18_v10 = vld [vmem:[%s657_s1] sm:$0xff]  ;;  %v19_v11 = vld [vmem:[%s657_s1 + $0x8] sm:$0xff]  ;;  %v28_v12 = vpack.c.bf16 %v23_v9, %v22_v8  ;;  %v20_v16 = vld [vmem:[%s657_s1 + $0x10] sm:$0xff]  ;;  %v29_v18 = vpack.c.bf16 %v25_v15, %v24_v14 }
   0x6   :  { %463 = vmatpush.bf16.msra.mxu2 %v456_v1  ;;  %95 = vmatpush.bf16.msra.mxu0 %v456_v1  ;;  %v26_v13 = vpack.c.bf16 %v19_v11, %v18_v10  ;;  %v21_v17 = vld [vmem:[%s657_s1 + $0x18] sm:$0xff]  ;;  %v458_v32 = vld [vmem:[%s659_s0] sm:$0xff]  ;;  %v459_v33 = vld [vmem:[%s659_s0 + $0x8] sm:$0xff] }
   0x7   :  { %v27_v19 = vpack.c.bf16 %v21_v17, %v20_v16  ;;  %v460_v34 = vld [vmem:[%s659_s0 + $0x10] sm:$0xff]  ;;  %v461_v35 = vld [vmem:[%s659_s0 + $0x18] sm:$0xff]  ;;  %v604_v36 = vld [vmem:[%s658_s3] ss:$0 sm:$0xff] }
   0xa   :  { %464 = vmatpush.bf16.msra.mxu2 %v455_v2  ;;  %96 = vmatpush.bf16.msra.mxu0 %v455_v2 }
   0xe   :  { %465 = vmatpush.bf16.msra.mxu2 %v454_v3  ;;  %97 = vmatpush.bf16.msra.mxu0 %v454_v3 }
  0x12   :  { %466 = vmatpush.bf16.msra.mxu2 %v453_v4  ;;  %98 = vmatpush.bf16.msra.mxu0 %v453_v4 }
  0x16   :  { %467 = vmatpush.bf16.msra.mxu2 %v452_v5  ;;  %99 = vmatpush.bf16.msra.mxu0 %v452_v5 }
  0x1a   :  { %468 = vmatpush.bf16.msra.mxu2 %v451_v6  ;;  %100 = vmatpush.bf16.msra.mxu0 %v451_v6 }
  0x1e   :  { %469 = vmatpush.bf16.msra.mxu2 %v450_v7  ;;  %101 = vmatpush.bf16.msra.mxu0 %v450_v7 }
  0x21   :  { %112 = vmatmul.bf16.vlgmr.msra.gmra.mxu2 %v28_v12  ;;  %102 = vmatmul.bf16.vlgmr.msra.gmra.mxu0 %v26_v13 }
  0x31   :  { %117 = vmatmul.bf16.gmra.mxu2 %v29_v18  ;;  %107 = vmatmul.bf16.gmra.mxu0 %v27_v19 }
  0x9e   :  { %v103_v20 = vpop.f32.mrf.mxu0 }
  0xa4   :  { %v113_v21 = vpop.f32.mrf.mxu2 }
  0xa6   :  { %v105_v23 = vpop.f32.mrf.mxu0 }
  0xa7   :  { %v131_v31 = vpack.c.bf16 %v105_v23, %v103_v20 }
  0xac   :  { %v580_v22 = vpop.f32.mrf.mxu2 }
  0xad   :  { %v133_v28 = vpack.c.bf16 %v580_v22, %v113_v21 }
  0xae   :  { %v108_v25 = vpop.f32.mrf.mxu0 }
  0xb4   :  { %v582_v24 = vpop.f32.mrf.mxu2 }
  0xb6   :  { %v110_v29 = vpop.f32.mrf.mxu0 }
  0xb7   :  { %v132_v30 = vpack.c.bf16 %v110_v29, %v108_v25 }
  0xbc   :  { %v584_v26 = vpop.f32.mrf.mxu2 }
  0xbd   :  { %v134_v27 = vpack.c.bf16 %v584_v26, %v582_v24 }
  0xbf   :  { %172 = vmatpush.bf16.msra.mxu1 %v134_v27  ;;  %470 = vmatpush.bf16.msra.mxu3 %v134_v27 }
  0xc3   :  { %173 = vmatpush.bf16.msra.mxu1 %v133_v28  ;;  %471 = vmatpush.bf16.msra.mxu3 %v133_v28 }
  0xc7   :  { %174 = vmatpush.bf16.msra.mxu1 %v132_v30  ;;  %472 = vmatpush.bf16.msra.mxu3 %v132_v30 }
  0xcb   :  { %175 = vmatpush.bf16.msra.mxu1 %v131_v31  ;;  %473 = vmatpush.bf16.msra.mxu3 %v131_v31 }
  0xce   :  { %438 = vmatmul.msk.bf16.vlgmr.msra.gmra.mxu1 %vm155_vm0, %v458_v32  ;;  %439 = vmatmul.msk.bf16.vlgmr.msra.gmra.mxu3 %vm155_vm0, %v459_v33 }
  0xde   :  { %440 = vmatmul.msk.bf16.gmra.mxu3 %vm155_vm0, %v460_v34 }
  0xee   :  { %441 = vmatmul.msk.bf16.gmra.mxu3 %vm155_vm0, %v461_v35 }
 0x14b   :  { %v177_v37 = vpop.f32.mrf.mxu1 }
 0x14c   :  { %v198_v38 = vadd.f32 %v177_v37, %v103_v20 }
 0x14e   :  { %v209_v39 = vadd.f32 %v604_v36, %v198_v38 }
 0x150   :  { %v217_v40 = vmax.f32 %v209_v39, 0.0 }
 0x151   :  { %v182_v41 = vpop.f32.mrf.mxu3 }
 0x152   :  { %v442_v42 = vmul.f32 -1.442695, %v217_v40  ;;  %v200_v43 = vadd.f32 %v182_v41, %v108_v25 }
 0x153   :  { %v179_v44 = vpop.f32.mrf.mxu1 }
 0x154   :  { %475 = vpow2.f32 %v442_v42  ;;  %v211_v45 = vadd.f32 %v604_v36, %v200_v43  ;;  %v199_v46 = vadd.f32 %v179_v44, %v105_v23 }
 0x156   :  { %v219_v47 = vmax.f32 %v211_v45, 0.0  ;;  %v210_v48 = vadd.f32 %v604_v36, %v199_v46 }
 0x158   :  { %v444_v49 = vmul.f32 -1.442695, %v219_v47  ;;  %v218_v50 = vmax.f32 %v210_v48, 0.0 }
 0x159   :  { %v184_v51 = vpop.f32.mrf.mxu3 }
 0x15a   :  { %v476_v52 = vpop.eup %475  ;;  %477 = vpow2.f32 %v444_v49  ;;  %v443_v53 = vmul.f32 -1.442695, %v218_v50  ;;  %v201_v54 = vadd.f32 %v184_v51, %v110_v29 }
 0x15b   :  { %v249_v55 = vadd.f32 1.0, %v476_v52 }
 0x15c   :  { %479 = vpow2.f32 %v443_v53  ;;  %v212_v56 = vadd.f32 %v604_v36, %v201_v54 }
 0x15d   :  { %481 = vrcp.f32 %v249_v55  ;;  %v266_v5 = vand.u32 2147483647, %v249_v55  ;;  %v268_v6 = vand.u32 2147483648, %v249_v55  ;;  %vm262_vm2 = vweird.f32 %v249_v55 }
 0x15e   :  { %v220_v57 = vmax.f32 %v212_v56, 0.0 }
 0x15f   :  { %vm267_vm4 = vcmp.eq.f32.partialorder %v266_v5, 8.507059e+37  ;;  %v269_v17 = vor.u32 1.1754944e-38, %v268_v6 }
 0x160   :  { %v478_v58 = vpop.eup %477  ;;  %v445_v59 = vmul.f32 -1.442695, %v220_v57 }
 0x161   :  { %v251_v60 = vadd.f32 1.0, %v478_v58  ;;  %v187_v61 = vpop.f32.mrf.mxu3 }
 0x162   :  { %v480_v62 = vpop.eup %479  ;;  %483 = vpow2.f32 %v445_v59  ;;  %v202_v63 = vadd.f32 %v187_v61, %v113_v21 }
 0x163   :  { %v482_v0 = vpop.eup %481  ;;  %485 = vrcp.f32 %v251_v60  ;;  %v250_v2 = vadd.f32 1.0, %v480_v62  ;;  %v296_v25 = vand.u32 2147483647, %v251_v60  ;;  %v298_v27 = vand.u32 2147483648, %v251_v60 }
 0x164   :  { %v258_v1 = vmul.f32 %v482_v0, %v249_v55  ;;  %v213_v3 = vadd.f32 %v604_v36, %v202_v63  ;;  %vm263_vm1 = vweird.f32 %v482_v0  ;;  %vm292_vm7 = vweird.f32 %v251_v60 }
 0x165   :  { %487 = vrcp.f32 %v250_v2  ;;  %vm264_vm3 = vmor %vm262_vm2, %vm263_vm1  ;;  %v281_v32 = vand.u32 2147483647, %v250_v2  ;;  %v283_v33 = vand.u32 2147483648, %v250_v2  ;;  %vm297_vm9 = vcmp.eq.f32.partialorder %v296_v25, 8.507059e+37 }
 0x166   :  { %v259_v4 = vsub.f32 1.0, %v258_v1  ;;  %v221_v7 = vmax.f32 %v213_v3, 0.0  ;;  %v299_v37 = vor.u32 1.1754944e-38, %v298_v27  ;;  %vm277_vm11 = vweird.f32 %v250_v2 }
 0x167   :  { %vm282_vm13 = vcmp.eq.f32.partialorder %v281_v32, 8.507059e+37  ;;  %v284_v47 = vor.u32 1.1754944e-38, %v283_v33 }
 0x168   :  { %v484_v8 = vpop.eup %483  ;;  %v260_v9 = vmul.f32 %v482_v0, %v259_v4  ;;  %v446_v12 = vmul.f32 -1.442695, %v221_v7 }
 0x169   :  { %v486_v10 = vpop.eup %485  ;;  %v611_v11 = vadd.f32 1.0, %v484_v8  ;;  %v189_v13 = vpop.f32.mrf.mxu3 }
 0x16a   :  { %v261_v14 = vadd.f32 %v482_v0, %v260_v9  ;;  %v288_v15 = vmul.f32 %v486_v10, %v251_v60  ;;  %v203_v16 = vadd.f32 %v189_v13, %v580_v22  ;;  %vm293_vm6 = vweird.f32 %v486_v10 }
 0x16b   :  { %489 = vrcp.f32 %v611_v11  ;;  %v488_v18 = vpop.eup %487  ;;  %vm294_vm8 = vmor %vm292_vm7, %vm293_vm6  ;;  %v311_v50 = vand.u32 2147483647, %v611_v11  ;;  %v313_v51 = vand.u32 2147483648, %v611_v11  ;;  %vm307_vm15 = vweird.f32 %v611_v11 }
 0x16c   :  { %v265_v19 = vsel %vm264_vm3, %v482_v0, %v261_v14  ;;  %v289_v20 = vsub.f32 1.0, %v288_v15  ;;  %491 = vpow2.f32 %v446_v12  ;;  %v214_v21 = vadd.f32 %v604_v36, %v203_v16 }
 0x16d   :  { %v270_v23 = vsel %vm267_vm4, %v269_v17, %v265_v19  ;;  %v273_v28 = vmul.f32 %v488_v18, %v250_v2  ;;  %vm278_vm10 = vweird.f32 %v488_v18  ;;  %v314_v57 = vor.u32 1.1754944e-38, %v313_v51 }
 0x16e   :  { %378 = vst.msk [vmem:[%s660_s4] sm:$0xff] %vm377_vm5, %v270_v23  ;;  %v290_v22 = vmul.f32 %v486_v10, %v289_v20  ;;  %v222_v29 = vmax.f32 %v214_v21, 0.0  ;;  %vm279_vm12 = vmor %vm277_vm11, %vm278_vm10  ;;  %vm312_vm1 = vcmp.eq.f32.partialorder %v311_v50, 8.507059e+37 }
 0x16f   :  { %v274_v30 = vsub.f32 1.0, %v273_v28 }
 0x170   :  { %v291_v31 = vadd.f32 %v486_v10, %v290_v22  ;;  %v447_v34 = vmul.f32 -1.442695, %v222_v29 }
 0x171   :  { %v490_v35 = vpop.eup %489  ;;  %v275_v38 = vmul.f32 %v488_v18, %v274_v30  ;;  %v192_v39 = vpop.f32.mrf.mxu3 }
 0x172   :  { %v492_v40 = vpop.eup %491  ;;  %v295_v41 = vsel %vm294_vm8, %v486_v10, %v291_v31  ;;  %v303_v42 = vmul.f32 %v490_v35, %v611_v11  ;;  %493 = vpow2.f32 %v447_v34  ;;  %v204_v46 = vadd.f32 %v192_v39, %v582_v24 }
 0x173   :  { %v300_v43 = vsel %vm297_vm9, %v299_v37, %v295_v41  ;;  %v276_v44 = vadd.f32 %v488_v18, %v275_v38  ;;  %v253_v45 = vadd.f32 1.0, %v492_v40  ;;  %vm308_vm14 = vweird.f32 %v490_v35 }
 0x174   :  { %380 = vst.msk [vmem:[%s660_s4 + $0x10] sm:$0xff] %vm377_vm5, %v300_v43  ;;  %v304_v48 = vsub.f32 1.0, %v303_v42  ;;  %v215_v24 = vadd.f32 %v604_v36, %v204_v46  ;;  %vm309_vm0 = vmor %vm307_vm15, %vm308_vm14 }
 0x175   :  { %v280_v49 = vsel %vm279_vm12, %v488_v18, %v276_v44  ;;  %495 = vrcp.f32 %v253_v45  ;;  %v328_v4 = vand.u32 2147483648, %v253_v45  ;;  %v326_v7 = vand.u32 2147483647, %v253_v45 }
 0x176   :  { %v285_v52 = vsel %vm282_vm13, %v284_v47, %v280_v49  ;;  %v305_v53 = vmul.f32 %v490_v35, %v304_v48  ;;  %v223_v56 = vmax.f32 %v215_v24, 0.0  ;;  %vm322_vm3 = vweird.f32 %v253_v45 }
 0x177   :  { %379 = vst.msk [vmem:[%s660_s4 + $0x8] sm:$0xff] %vm377_vm5, %v285_v52  ;;  %v329_v12 = vor.u32 1.1754944e-38, %v328_v4  ;;  %vm327_vm6 = vcmp.eq.f32.partialorder %v326_v7, 8.507059e+37 }
 0x178   :  { %v494_v54 = vpop.eup %493  ;;  %v306_v55 = vadd.f32 %v490_v35, %v305_v53  ;;  %v448_v61 = vmul.f32 -1.442695, %v223_v56 }
 0x179   :  { %v254_v58 = vadd.f32 1.0, %v494_v54  ;;  %v194_v59 = vpop.f32.mrf.mxu3 }
 0x17a   :  { %v310_v60 = vsel %vm309_vm0, %v490_v35, %v306_v55  ;;  %v205_v62 = vadd.f32 %v194_v59, %v584_v26 }
 0x17b   :  { %v496_v63 = vpop.eup %495  ;;  %v315_v0 = vsel %vm312_vm1, %v314_v57, %v310_v60  ;;  %497 = vrcp.f32 %v254_v58  ;;  %v343_v16 = vand.u32 2147483648, %v254_v58  ;;  %v341_v18 = vand.u32 2147483647, %v254_v58 }
 0x17c   :  { %381 = vst.msk [vmem:[%s660_s4 + $0x18] sm:$0xff] %vm377_vm5, %v315_v0  ;;  %v318_v1 = vmul.f32 %v496_v63, %v253_v45  ;;  %499 = vpow2.f32 %v448_v61  ;;  %v216_v2 = vadd.f32 %v604_v36, %v205_v62  ;;  %vm323_vm2 = vweird.f32 %v496_v63 }
 0x17d   :  { %vm324_vm4 = vmor %vm322_vm3, %vm323_vm2  ;;  %vm337_vm8 = vweird.f32 %v254_v58  ;;  %v344_v21 = vor.u32 1.1754944e-38, %v343_v16  ;;  %vm342_vm10 = vcmp.eq.f32.partialorder %v341_v18, 8.507059e+37 }
 0x17e   :  { %v319_v3 = vsub.f32 1.0, %v318_v1  ;;  %v224_v5 = vmax.f32 %v216_v2, 0.0 }
 0x180   :  { %v320_v6 = vmul.f32 %v496_v63, %v319_v3  ;;  %v449_v26 = vmul.f32 -1.442695, %v224_v5 }
 0x181   :  { %v498_v8 = vpop.eup %497 }
 0x182   :  { %v500_v9 = vpop.eup %499  ;;  %v321_v10 = vadd.f32 %v496_v63, %v320_v6  ;;  %v333_v11 = vmul.f32 %v498_v8, %v254_v58  ;;  %501 = vpow2.f32 %v449_v26  ;;  %vm338_vm7 = vweird.f32 %v498_v8 }
 0x183   :  { %v255_v13 = vadd.f32 1.0, %v500_v9  ;;  %vm339_vm9 = vmor %vm337_vm8, %vm338_vm7 }
 0x184   :  { %v325_v14 = vsel %vm324_vm4, %v496_v63, %v321_v10  ;;  %v334_v15 = vsub.f32 1.0, %v333_v11 }
 0x185   :  { %v330_v36 = vsel %vm327_vm6, %v329_v12, %v325_v14  ;;  %503 = vrcp.f32 %v255_v13  ;;  %v358_v30 = vand.u32 2147483648, %v255_v13  ;;  %v356_v32 = vand.u32 2147483647, %v255_v13 }
 0x186   :  { %382 = vst.msk [vmem:[%s660_s4 + $0x20] sm:$0xff] %vm377_vm5, %v330_v36  ;;  %v335_v17 = vmul.f32 %v498_v8, %v334_v15  ;;  %vm352_vm12 = vweird.f32 %v255_v13 }
 0x187   :  { %v359_v35 = vor.u32 1.1754944e-38, %v358_v30  ;;  %vm357_vm14 = vcmp.eq.f32.partialorder %v356_v32, 8.507059e+37 }
 0x188   :  { %v336_v19 = vadd.f32 %v498_v8, %v335_v17  ;;  %v502_v20 = vpop.eup %501 }
 0x189   :  { %v256_v25 = vadd.f32 1.0, %v502_v20 }
 0x18a   :  { %v340_v23 = vsel %vm339_vm9, %v498_v8, %v336_v19 }
 0x18b   :  { %v504_v27 = vpop.eup %503  ;;  %v345_v28 = vsel %vm342_vm10, %v344_v21, %v340_v23  ;;  %505 = vrcp.f32 %v256_v25  ;;  %v373_v41 = vand.u32 2147483648, %v256_v25  ;;  %v371_v43 = vand.u32 2147483647, %v256_v25 }
 0x18c   :  { %383 = vst.msk [vmem:[%s660_s4 + $0x28] sm:$0xff] %vm377_vm5, %v345_v28  ;;  %v348_v22 = vmul.f32 %v504_v27, %v255_v13  ;;  %vm353_vm11 = vweird.f32 %v504_v27  ;;  %vm367_vm0 = vweird.f32 %v256_v25 }
 0x18d   :  { %vm354_vm13 = vmor %vm352_vm12, %vm353_vm11  ;;  %v374_v45 = vor.u32 1.1754944e-38, %v373_v41  ;;  %vm372_vm2 = vcmp.eq.f32.partialorder %v371_v43, 8.507059e+37 }
 0x18e   :  { %v349_v29 = vsub.f32 1.0, %v348_v22 }
 0x190   :  { %v350_v31 = vmul.f32 %v504_v27, %v349_v29 }
 0x191   :  { %v506_v33 = vpop.eup %505 }
 0x192   :  { %v351_v34 = vadd.f32 %v504_v27, %v350_v31  ;;  %v363_v37 = vmul.f32 %v506_v33, %v256_v25  ;;  %vm368_vm15 = vweird.f32 %v506_v33 }
 0x193   :  { %vm369_vm1 = vmor %vm367_vm0, %vm368_vm15 }
 0x194   :  { %v355_v38 = vsel %vm354_vm13, %v504_v27, %v351_v34  ;;  %v364_v40 = vsub.f32 1.0, %v363_v37 }
 0x195   :  { %v360_v39 = vsel %vm357_vm14, %v359_v35, %v355_v38 }
 0x196   :  { %384 = vst.msk [vmem:[%s660_s4 + $0x30] sm:$0xff] %vm377_vm5, %v360_v39  ;;  %v365_v42 = vmul.f32 %v506_v33, %v364_v40 }
 0x198   :  { %v366_v44 = vadd.f32 %v506_v33, %v365_v42 }
 0x19a   :  { %v370_v46 = vsel %vm369_vm1, %v506_v33, %v366_v44 }
 0x19b   :  { %v375_v47 = vsel %vm372_vm2, %v374_v45, %v370_v46 }
 0x19c   :  { %385 = vst.msk [vmem:[%s660_s4 + $0x38] sm:$0xff] %vm377_vm5, %v375_v47 }

// kernel: premodel_forward.3
= control target key start
LH: loop header
LB: loop body
LE: loop exit
PB: predicated region body
PF: predicated region fallthrough
CT: control target
= control target key end

     0   :  { %v1736_v3 = vmov 0   ;;  %s2403_s0 = inlined_call_operand.vmem [shape: bf16[64,64], index: 0, kind: input, shape index: {}]   ;;  %s2404_s1 = inlined_call_operand.vmem [shape: f32[64,128], index: 1, kind: input, shape index: {}]   ;;  %s2405_s2 = inlined_call_operand.vmem [shape: s32[64,1], index: 2, kind: input, shape index: {}]   ;;  %s2406_s3 = inlined_call_operand.vmem [shape: f32[64,1], index: 3, kind: input, shape index: {}]   ;;  %s2407_s4 = inlined_call_operand.vmem [shape: f32[64,1], index: 4, kind: input, shape index: {}]   ;;  %s2408_s5 = inlined_call_operand.vmem [shape: f32[64,1], index: 5, kind: input, shape index: {}]   ;;  %s2409_s6 = inlined_call_operand.vmem [shape: f32[64,1], index: 6, kind: input, shape index: {}]   ;;  %s2410_s7 = inlined_call_operand.vmem [shape: f32[1,128], index: 7, kind: input, shape index: {}]   ;;  %s2411_s8 = inlined_call_operand.vmem [shape: bf16[128,128], index: 8, kind: input, shape index: {}]   ;;  %s2412_s9 = inlined_call_operand.vmem [shape: f32[1,128], index: 9, kind: input, shape index: {}]   ;;  %s2413_s10 = inlined_call_operand.vmem [shape: bf16[128,128], index: 10, kind: input, shape index: {}]   ;;  %s2414_s11 = inlined_call_operand.vmem [shape: f32[1,128], index: 11, kind: input, shape index: {}]   ;;  %s2415_s12 = inlined_call_operand.vmem [shape: bf16[128,128], index: 12, kind: input, shape index: {}]   ;;  %s2416_s13 = inlined_call_operand.vmem [shape: bf16[128,128], index: 13, kind: input, shape index: {}]   ;;  %s2417_s14 = inlined_call_operand.vmem [shape: f32[1,128], index: 14, kind: input, shape index: {}]   ;;  %s2418_s15 = inlined_call_operand.hbm [shape: f32[1], index: 15, kind: output, shape index: {}]  }
   0x1   :  { %v97_v0 = vld [vmem:[%s2405_s2 + $0x20] sm:$0xff]  ;;  %v95_v1 = vld [vmem:[%s2405_s2 + $0x10] sm:$0xff]  ;;  %1667 = vset.pattern.permute.xlu2 %v1736_v3  ;;  %1666 = vset.pattern.permute.xlu1 %v1736_v3 }
   0x2   :  { %v93_v2 = vld [vmem:[%s2405_s2] sm:$0xff]  ;;  %1665 = vset.pattern.permute.xlu0 %v1736_v3  ;;  %124 = vperm.xlu2 %1667, %v97_v0  }
   0x3   :  { %118 = vperm.xlu1 %1666, %v95_v1   ;;  %112 = vperm.xlu0 %1665, %v93_v2  }
   0x4   :  { %20 = vsyncpa [#allocation3], 0  ;;  %v98_v4 = vld [vmem:[%s2405_s2 + $0x28] sm:$0xff]  ;;  %v96_v5 = vld [vmem:[%s2405_s2 + $0x18] sm:$0xff]  ;;  %v109_v0 = vlaneseq  ;;  %vm167_vm2 = vcmask 523264   ;;  %s1738_s20 = smov 1.0  }
   0x5   :  { %v94_v6 = vld [vmem:[%s2405_s2 + $0x8] sm:$0xff]  ;;  %v107_v7 = vld [vmem:[%s2406_s3 + $0x30] sm:$0xff]  ;;  %v100_v8 = vld [vmem:[%s2405_s2 + $0x38] sm:$0xff]  ;;  %s1433_s23 = sshll.u32 %s2418_s15, 4  ;;  %s1434_s23 = int_to_ptr.hbm [resolvable:$true] %s1433_s23 }
   0x6   :  { %v99_v9 = vld [vmem:[%s2405_s2 + $0x30] sm:$0xff]  ;;  %v106_v10 = vld [vmem:[%s2406_s3 + $0x28] sm:$0xff]  ;;  %v105_v11 = vld [vmem:[%s2406_s3 + $0x20] sm:$0xff] }
   0x7   :  { %v108_v12 = vld [vmem:[%s2406_s3 + $0x38] sm:$0xff]  ;;  %v74_v14 = vld [vmem:[%s2407_s4 + $0x30] sm:$0xff]  ;;  %v73_v19 = vld [vmem:[%s2407_s4 + $0x28] sm:$0xff] }
   0x8   :  { %v75_v13 = vld [vmem:[%s2407_s4 + $0x38] sm:$0xff]  ;;  %v279_v16 = vsub.f32 1.0, %v74_v14  ;;  %v103_v18 = vld [vmem:[%s2406_s3 + $0x10] sm:$0xff]  ;;  %v72_v20 = vld [vmem:[%s2407_s4 + $0x20] sm:$0xff]  ;;  %v278_v21 = vsub.f32 1.0, %v73_v19 }
   0x9   :  { %v280_v15 = vsub.f32 1.0, %v75_v13  ;;  %v104_v17 = vld [vmem:[%s2406_s3 + $0x18] sm:$0xff]  ;;  %v277_v22 = vsub.f32 1.0, %v72_v20  ;;  %v82_v24 = vld [vmem:[%s2408_s5 + $0x30] sm:$0xff]  ;;  %v102_v27 = vld [vmem:[%s2406_s3 + $0x8] sm:$0xff] }
   0xa   :  { %127 = vperm.xlu2 %1667, %v98_v4   ;;  %v83_v23 = vld [vmem:[%s2408_s5 + $0x38] sm:$0xff]  ;;  %v70_v25 = vld [vmem:[%s2407_s4 + $0x10] sm:$0xff]  ;;  %v101_v28 = vld [vmem:[%s2406_s3] sm:$0xff] }
   0xb   :  { %121 = vperm.xlu1 %1666, %v96_v5   ;;  %115 = vperm.xlu0 %1665, %v94_v6   ;;  %v275_v26 = vsub.f32 1.0, %v70_v25  ;;  %v71_v29 = vld [vmem:[%s2407_s4 + $0x18] sm:$0xff]  ;;  %v68_v31 = vld [vmem:[%s2407_s4] sm:$0xff]  ;;  %v81_v34 = vld [vmem:[%s2408_s5 + $0x28] sm:$0xff] }
   0xc   :  { %v276_v30 = vsub.f32 1.0, %v71_v29  ;;  %v273_v32 = vsub.f32 1.0, %v68_v31  ;;  %v80_v33 = vld [vmem:[%s2408_s5 + $0x20] sm:$0xff]  ;;  %v1904_v35 = vld [vmem:[%s2404_s1 + $0x30] sm:$0xff]  ;;  %v1909_v36 = vld [vmem:[%s2404_s1 + $0x38] sm:$0xff] }
   0xd   :  { %v166_v37 = vpack.c.bf16 %v1909_v36, %v1904_v35  ;;  %v69_v38 = vld [vmem:[%s2407_s4 + $0x8] sm:$0xff]  ;;  %v1919_v39 = vld [vmem:[%s2404_s1 + $0x20] sm:$0xff]  ;;  %v1931_v43 = vld [vmem:[%s2404_s1 + $0x10] sm:$0xff] }
   0xe   :  { %v1924_v40 = vld [vmem:[%s2404_s1 + $0x28] sm:$0xff]  ;;  %v274_v42 = vsub.f32 1.0, %v69_v38  ;;  %v1936_v44 = vld [vmem:[%s2404_s1 + $0x18] sm:$0xff]  ;;  %v1943_v46 = vld [vmem:[%s2404_s1] sm:$0xff] }
   0xf   :  { %184 = vmatpush.bf16.msra.mxu0 %v166_v37  ;;  %v165_v41 = vpack.c.bf16 %v1924_v40, %v1919_v39  ;;  %v164_v45 = vpack.c.bf16 %v1936_v44, %v1931_v43  ;;  %v1948_v47 = vld [vmem:[%s2404_s1 + $0x8] sm:$0xff]  ;;  %v76_v49 = vld [vmem:[%s2408_s5] sm:$0xff]  ;;  %v78_v50 = vld [vmem:[%s2408_s5 + $0x10] sm:$0xff] }
  0x10   :  { %v163_v48 = vpack.c.bf16 %v1948_v47, %v1943_v46  ;;  %v79_v51 = vld [vmem:[%s2408_s5 + $0x18] sm:$0xff]  ;;  %v90_v53 = vld [vmem:[%s2409_s6 + $0x30] sm:$0xff]  ;;  %v77_v56 = vld [vmem:[%s2408_s5 + $0x8] sm:$0xff] }
  0x11   :  { %v91_v52 = vld [vmem:[%s2409_s6 + $0x38] sm:$0xff]  ;;  %v871_v55 = vsub.f32 1.0, %v90_v53  ;;  %v86_v57 = vld [vmem:[%s2409_s6 + $0x10] sm:$0xff]  ;;  %v88_v58 = vld [vmem:[%s2409_s6 + $0x20] sm:$0xff] }
  0x12   :  { %249 = vperm.xlu2 %1667, %v107_v7   ;;  %v872_v54 = vsub.f32 1.0, %v91_v52  ;;  %v89_v59 = vld [vmem:[%s2409_s6 + $0x28] sm:$0xff]  ;;  %v867_v60 = vsub.f32 1.0, %v86_v57  ;;  %v869_v61 = vsub.f32 1.0, %v88_v58  ;;  %v87_v1 = vld [vmem:[%s2409_s6 + $0x18] sm:$0xff]  ;;  %v84_v2 = vld [vmem:[%s2409_s6] sm:$0xff] }
  0x13   :  { %133 = vperm.xlu1 %1666, %v100_v8   ;;  %130 = vperm.xlu0 %1665, %v99_v9   ;;  %v870_v62 = vsub.f32 1.0, %v89_v59  ;;  %v85_v63 = vld [vmem:[%s2409_s6 + $0x8] sm:$0xff]  ;;  %v868_v5 = vsub.f32 1.0, %v87_v1  ;;  %v865_v6 = vsub.f32 1.0, %v84_v2  ;;  %v110_v7 = vand.u32 127, %v109_v0 }
  0x14   :  { %185 = vmatpush.bf16.msra.mxu0 %v165_v41  ;;  %v866_v4 = vsub.f32 1.0, %v85_v63 }
  0x18   :  { %186 = vmatpush.bf16.msra.mxu0 %v164_v45 }
  0x1a   :  { %244 = vperm.xlu2 %1667, %v106_v10   ;;  %v1737_v10 = vmov 0.0  }
  0x1b   :  { %239 = vperm.xlu1 %1666, %v105_v11   ;;  %254 = vperm.xlu0 %1665, %v108_v12  }
  0x1c   :  { %187 = vmatpush.bf16.msra.mxu0 %v163_v48 }
  0x22   :  { %361 = vperm.xlu2 %1667, %v74_v14  }
  0x23   :  { %318 = vperm.xlu1 %1666, %v280_v15   ;;  %313 = vperm.xlu0 %1665, %v279_v16  }
  0x2a   :  { %234 = vperm.xlu2 %1667, %v104_v17  }
  0x2b   :  { %229 = vperm.xlu1 %1666, %v103_v18   ;;  %366 = vperm.xlu0 %1665, %v75_v13  }
  0x32   :  { %351 = vperm.xlu2 %1667, %v72_v20  }
  0x33   :  { %308 = vperm.xlu1 %1666, %v278_v21   ;;  %303 = vperm.xlu0 %1665, %v277_v22  }
  0x3a   :  { %425 = vperm.xlu2 %1667, %v83_v23  }
  0x3b   :  { %420 = vperm.xlu1 %1666, %v82_v24   ;;  %356 = vperm.xlu0 %1665, %v73_v19  }
  0x42   :  { %293 = vperm.xlu2 %1667, %v275_v26  }
  0x43   :  { %224 = vperm.xlu1 %1666, %v102_v27   ;;  %219 = vperm.xlu0 %1665, %v101_v28  }
  0x4a   :  { %346 = vperm.xlu2 %1667, %v71_v29  }
  0x4b   :  { %298 = vperm.xlu0 %1665, %v276_v30   ;;  %341 = vperm.xlu1 %1666, %v70_v25  }
  0x52   :  { %283 = vperm.xlu2 %1667, %v273_v32  }
  0x53   :  { %410 = vperm.xlu0 %1665, %v80_v33   ;;  %415 = vperm.xlu1 %1666, %v81_v34  }
  0x5a   :  { %336 = vperm.xlu2 %1667, %v69_v38  }
  0x5b   :  { %288 = vperm.xlu0 %1665, %v274_v42   ;;  %331 = vperm.xlu1 %1666, %v68_v31  }
  0x5c   :  { %v125_v17 = vpop.permute.xlu2 %124 }
  0x5d   :  { %vm139_vm5 = vcmp.eq.s32.totalorder %v110_v7, %v125_v17 }
  0x5e   :  { %v1447_v20 = vsel %vm139_vm5, 1.0, %v1737_v10 }
  0x62   :  { %390 = vperm.xlu2 %1667, %v76_v49  }
  0x63   :  { %400 = vperm.xlu0 %1665, %v78_v50   ;;  %405 = vperm.xlu1 %1666, %v79_v51  }
  0x64   :  { %v128_v19 = vpop.permute.xlu2 %127 }
  0x65   :  { %vm140_vm6 = vcmp.eq.s32.totalorder %v110_v7, %v128_v19 }
  0x66   :  { %v1448_v21 = vsel %vm140_vm6, 1.0, %v1737_v10 }
  0x67   :  { %v161_v22 = vpack.c.bf16 %v1448_v21, %v1447_v20 }
  0x6a   :  { %910 = vperm.xlu2 %1667, %v872_v54  }
  0x6b   :  { %395 = vperm.xlu0 %1665, %v77_v56   ;;  %905 = vperm.xlu1 %1666, %v871_v55  }
  0x6c   :  { %v250_v29 = vpop.permute.xlu2 %249 }
  0x72   :  { %885 = vperm.xlu2 %1667, %v867_v60  }
  0x73   :  { %895 = vperm.xlu0 %1665, %v869_v61   ;;  %900 = vperm.xlu1 %1666, %v870_v62  }
  0x74   :  { %v245_v32 = vpop.permute.xlu2 %244 }
  0x75   :  { %v113_v3 = vpop.permute.xlu0 %112  ;;  %v119_v9 = vpop.permute.xlu1 %118 }
  0x76   :  { %vm135_vm0 = vcmp.eq.s32.totalorder %v110_v7, %v113_v3  ;;  %vm137_vm3 = vcmp.eq.s32.totalorder %v110_v7, %v119_v9 }
  0x77   :  { %v1443_v11 = vsel %vm135_vm0, 1.0, %v1737_v10  ;;  %v1445_v15 = vsel %vm137_vm3, 1.0, %v1737_v10 }
  0x7a   :  { %880 = vperm.xlu2 %1667, %v866_v4  }
  0x7b   :  { %890 = vperm.xlu0 %1665, %v868_v5   ;;  %875 = vperm.xlu1 %1666, %v865_v6  }
  0x7c   :  { %v362_v37 = vpop.permute.xlu2 %361 }
  0x7d   :  { %v116_v8 = vpop.permute.xlu0 %115  ;;  %v122_v14 = vpop.permute.xlu1 %121 }
  0x7e   :  { %vm136_vm1 = vcmp.eq.s32.totalorder %v110_v7, %v116_v8  ;;  %vm138_vm4 = vcmp.eq.s32.totalorder %v110_v7, %v122_v14 }
  0x7f   :  { %v1444_v12 = vsel %vm136_vm1, 1.0, %v1737_v10  ;;  %v1446_v16 = vsel %vm138_vm4, 1.0, %v1737_v10 }
  0x80   :  { %v159_v13 = vpack.c.bf16 %v1444_v12, %v1443_v11  ;;  %v160_v18 = vpack.c.bf16 %v1446_v16, %v1445_v15  ;;  %v1668_v12 = vld [vmem:[%s2410_s7] ss:$0 sm:$0xff] }
  0x82   :  { %1451 = vmatmul.msk.bf16.vlgmr.msra.gmra.mxu0 %vm167_vm2, %v159_v13 }
  0x84   :  { %v235_v45 = vpop.permute.xlu2 %234 }
  0x85   :  { %v134_v23 = vpop.permute.xlu1 %133  ;;  %v131_v24 = vpop.permute.xlu0 %130 }
  0x86   :  { %vm142_vm7 = vcmp.eq.s32.totalorder %v110_v7, %v134_v23  ;;  %vm141_vm8 = vcmp.eq.s32.totalorder %v110_v7, %v131_v24 }
  0x87   :  { %v1450_v25 = vsel %vm142_vm7, 1.0, %v1737_v10  ;;  %v1449_v26 = vsel %vm141_vm8, 1.0, %v1737_v10 }
  0x88   :  { %v162_v27 = vpack.c.bf16 %v1450_v25, %v1449_v26  ;;  %v378_v25 = vmul.f32 %v1668_v12, %v362_v37 }
  0x8c   :  { %v352_v52 = vpop.permute.xlu2 %351 }
  0x8d   :  { %v255_v28 = vpop.permute.xlu0 %254  ;;  %v240_v30 = vpop.permute.xlu1 %239 }
  0x92   :  { %1452 = vmatmul.msk.bf16.gmra.mxu0 %vm167_vm2, %v160_v18 }
  0x94   :  { %v426_v56 = vpop.permute.xlu2 %425 }
  0x95   :  { %v314_v31 = vpop.permute.xlu0 %313  ;;  %v319_v33 = vpop.permute.xlu1 %318 }
  0x9c   :  { %v294_v60 = vpop.permute.xlu2 %293 }
  0x9d   :  { %v367_v34 = vpop.permute.xlu0 %366  ;;  %v230_v41 = vpop.permute.xlu1 %229 }
  0xa2   :  { %1453 = vmatmul.msk.bf16.gmra.mxu0 %vm167_vm2, %v161_v22 }
  0xa4   :  { %v347_v0 = vpop.permute.xlu2 %346 }
  0xa5   :  { %v304_v42 = vpop.permute.xlu0 %303  ;;  %v309_v49 = vpop.permute.xlu1 %308 }
  0xac   :  { %v284_v19 = vpop.permute.xlu2 %283 }
  0xad   :  { %v357_v50 = vpop.permute.xlu0 %356  ;;  %v421_v53 = vpop.permute.xlu1 %420 }
  0xb2   :  { %1454 = vmatmul.msk.bf16.gmra.mxu0 %vm167_vm2, %v162_v27 }
  0xb5   :  { %v220_v55 = vpop.permute.xlu0 %219  ;;  %v225_v57 = vpop.permute.xlu1 %224 }
  0xbd   :  { %v299_v59 = vpop.permute.xlu0 %298  ;;  %v342_v62 = vpop.permute.xlu1 %341 }
  0xc5   :  { %v411_v63 = vpop.permute.xlu0 %410  ;;  %v416_v6 = vpop.permute.xlu1 %415 }
  0xcd   :  { %v289_v13 = vpop.permute.xlu0 %288 }
  0xff   :  { %v189_v38 = vpop.f32.mrf.mxu0 }
 0x100   :  { %v209_v20 = vsub.f32 %v189_v38, %v1943_v46 }
 0x107   :  { %v191_v48 = vpop.f32.mrf.mxu0 }
 0x108   :  { %v210_v15 = vsub.f32 %v191_v48, %v1948_v47  ;;  %v332_v48 = vpop.permute.xlu1 %331 }
 0x10a   :  { %v258_v26 = vmul.f32 %v225_v57, %v210_v15 }
 0x10f   :  { %v194_v51 = vpop.f32.mrf.mxu0 }
 0x110   :  { %v211_v9 = vsub.f32 %v194_v51, %v1931_v43  ;;  %v257_v51 = vmul.f32 %v220_v55, %v209_v20  ;;  %v337_v55 = vpop.permute.xlu2 %336  ;;  %v1629_v20 = vld [vmem:[%s2411_s8 + $0x30] sm:$0xff] }
 0x112   :  { %v259_v21 = vmul.f32 %v230_v41, %v211_v9 }
 0x117   :  { %v196_v54 = vpop.f32.mrf.mxu0 }
 0x118   :  { %v212_v7 = vsub.f32 %v196_v54, %v1936_v44  ;;  %v267_v54 = vadd.f32 %v259_v21, %v1931_v43  ;;  %v1628_v21 = vld [vmem:[%s2411_s8 + $0x28] sm:$0xff] }
 0x11a   :  { %v260_v16 = vmul.f32 %v235_v45, %v212_v7  ;;  %v377_v45 = vmul.f32 %v1668_v12, %v357_v50 }
 0x11c   :  { %v268_v27 = vadd.f32 %v260_v16, %v1936_v44 }
 0x11f   :  { %v199_v58 = vpop.f32.mrf.mxu0 }
 0x120   :  { %v213_v4 = vsub.f32 %v199_v58, %v1919_v39 }
 0x122   :  { %v261_v10 = vmul.f32 %v240_v30, %v213_v4 }
 0x124   :  { %v269_v22 = vadd.f32 %v261_v10, %v1919_v39  ;;  %v406_v10 = vpop.permute.xlu1 %405 }
 0x126   :  { %v325_v58 = vmul.f32 %v304_v42, %v269_v22  ;;  %v1627_v22 = vld [vmem:[%s2411_s8 + $0x20] sm:$0xff] }
 0x127   :  { %v201_v61 = vpop.f32.mrf.mxu0 }
 0x128   :  { %v214_v2 = vsub.f32 %v201_v61, %v1924_v40  ;;  %v376_v61 = vmul.f32 %v1668_v12, %v352_v52 }
 0x12a   :  { %v262_v8 = vmul.f32 %v245_v32, %v214_v2  ;;  %v379_v32 = vmul.f32 %v1668_v12, %v367_v34  ;;  %v401_v2 = vpop.permute.xlu0 %400  ;;  %v384_v4 = vadd.f32 %v376_v61, %v325_v58 }
 0x12c   :  { %v270_v17 = vadd.f32 %v262_v8, %v1924_v40  ;;  %v373_v8 = vmul.f32 %v1668_v12, %v337_v55 }
 0x12f   :  { %v204_v1 = vpop.f32.mrf.mxu0 }
 0x130   :  { %v215_v3 = vsub.f32 %v204_v1, %v1904_v35  ;;  %v375_v1 = vmul.f32 %v1668_v12, %v347_v0 }
 0x132   :  { %v263_v5 = vmul.f32 %v250_v29, %v215_v3  ;;  %v326_v29 = vmul.f32 %v309_v49, %v270_v17  ;;  %v265_v49 = vadd.f32 %v257_v51, %v1943_v46  ;;  %v323_v3 = vmul.f32 %v294_v60, %v267_v54  ;;  %v391_v17 = vpop.permute.xlu2 %390 }
 0x134   :  { %v271_v11 = vadd.f32 %v263_v5, %v1904_v35  ;;  %v385_v57 = vadd.f32 %v377_v45, %v326_v29  ;;  %v374_v5 = vmul.f32 %v1668_v12, %v342_v62  ;;  %v321_v9 = vmul.f32 %v284_v19, %v265_v49  ;;  %v396_v62 = vpop.permute.xlu0 %395  ;;  %v1630_v19 = vld [vmem:[%s2411_s8 + $0x38] sm:$0xff]  ;;  %v1623_v29 = vld [vmem:[%s2411_s8] sm:$0xff] }
 0x135   :  { %581 = vmatpush.bf16.msra.mxu2 %v1630_v19 }
 0x136   :  { %v327_v23 = vmul.f32 %v314_v31, %v271_v11  ;;  %v266_v31 = vadd.f32 %v258_v26, %v1948_v47  ;;  %v382_v0 = vadd.f32 %v374_v5, %v323_v3  ;;  %v372_v11 = vmul.f32 %v1668_v12, %v332_v48  ;;  %v2024_v12 = vld [vmem:[%s2403_s0 + $0x8] sm:$0xff]  ;;  %v1625_v26 = vld [vmem:[%s2411_s8 + $0x10] sm:$0xff] }
 0x137   :  { %v206_v14 = vpop.f32.mrf.mxu0 }
 0x138   :  { %v216_v18 = vsub.f32 %v206_v14, %v1909_v36  ;;  %v386_v41 = vadd.f32 %v378_v25, %v327_v23  ;;  %v322_v7 = vmul.f32 %v289_v13, %v266_v31  ;;  %v380_v15 = vadd.f32 %v372_v11, %v321_v9  ;;  %v2043_v23 = vld [vmem:[%s2403_s0 + $0x10] sm:$0xff]  ;;  %v2053_v25 = vld [vmem:[%s2403_s0 + $0x18] sm:$0xff] }
 0x139   :  { %582 = vmatpush.bf16.msra.mxu2 %v1629_v20 }
 0x13a   :  { %v264_v24 = vmul.f32 %v255_v28, %v216_v18  ;;  %v324_v28 = vmul.f32 %v299_v59, %v268_v27  ;;  %v434_v34 = vmul.f32 %v421_v53, %v386_v41  ;;  %v432_v59 = vmul.f32 %v411_v63, %v384_v4  ;;  %v2017_v63 = vld [vmem:[%s2403_s0] sm:$0xff]  ;;  %v1624_v27 = vld [vmem:[%s2411_s8 + $0x8] sm:$0xff] }
 0x13b   :  { %v381_v53 = vadd.f32 %v373_v8, %v322_v7 }
 0x13c   :  { %v272_v30 = vadd.f32 %v264_v24, %v1909_v36  ;;  %v383_v52 = vadd.f32 %v375_v1, %v324_v28  ;;  %v1626_v24 = vld [vmem:[%s2411_s8 + $0x18] sm:$0xff] }
 0x13d   :  { %v429_v16 = vmul.f32 %v396_v62, %v381_v53  ;;  %583 = vmatpush.bf16.msra.mxu2 %v1628_v21 }
 0x13e   :  { %v328_v38 = vmul.f32 %v319_v33, %v272_v30  ;;  %v433_v33 = vmul.f32 %v416_v6, %v385_v57  ;;  %v431_v60 = vmul.f32 %v406_v10, %v383_v52  ;;  %v428_v6 = vmul.f32 %v391_v17, %v380_v15 }
 0x140   :  { %v387_v37 = vadd.f32 %v379_v32, %v328_v38  ;;  %v438_v14 = vpack.c.bf16 %v433_v33, %v432_v59  ;;  %v436_v18 = vpack.c.bf16 %v429_v16, %v428_v6 }
 0x141   :  { %584 = vmatpush.bf16.msra.mxu2 %v1627_v22 }
 0x142   :  { %v435_v50 = vmul.f32 %v426_v56, %v387_v37  ;;  %v430_v56 = vmul.f32 %v401_v2, %v382_v0  ;;  %v457_v32 = vunpack.c.l.bf16 %v436_v18  ;;  %v458_v45 = vunpack.c.h.bf16 %v436_v18 }
 0x143   :  { %v461_v2 = vunpack.c.l.bf16 %v438_v14  ;;  %v462_v49 = vunpack.c.h.bf16 %v438_v14 }
 0x144   :  { %v2011_v42 = vpack.c.bf16 %v435_v50, %v434_v34  ;;  %v437_v13 = vpack.c.bf16 %v431_v60, %v430_v56  ;;  %v1669_v56 = vld [vmem:[%s2412_s9] ss:$0 sm:$0xff] }
 0x145   :  { %585 = vmatpush.bf16.msra.mxu2 %v1626_v24 }
 0x146   :  { %501 = vmatpush.bf16.msra.mxu1 %v2011_v42  ;;  %v459_v41 = vunpack.c.l.bf16 %v437_v13  ;;  %v460_v61 = vunpack.c.h.bf16 %v437_v13  ;;  %v463_v5 = vunpack.c.l.bf16 %v2011_v42  ;;  %v464_v7 = vunpack.c.h.bf16 %v2011_v42 }
 0x149   :  { %586 = vmatpush.bf16.msra.mxu2 %v1625_v26 }
 0x14a   :  { %502 = vmatpush.bf16.msra.mxu1 %v438_v14 }
 0x14d   :  { %587 = vmatpush.bf16.msra.mxu2 %v1624_v27 }
 0x14e   :  { %503 = vmatpush.bf16.msra.mxu1 %v437_v13 }
 0x151   :  { %588 = vmatpush.bf16.msra.mxu2 %v1623_v29 }
 0x152   :  { %504 = vmatpush.bf16.msra.mxu1 %v436_v18 }
 0x155   :  { %1471 = vmatmul.msk.bf16.vlgmr.msra.gmra.mxu1 %vm167_vm2, %v2017_v63 }
 0x165   :  { %1472 = vmatmul.msk.bf16.gmra.mxu1 %vm167_vm2, %v2024_v12 }
 0x175   :  { %1473 = vmatmul.msk.bf16.gmra.mxu1 %vm167_vm2, %v2043_v23 }
 0x185   :  { %1474 = vmatmul.msk.bf16.gmra.mxu1 %vm167_vm2, %v2053_v25 }
 0x1d2   :  { %v506_v30 = vpop.f32.mrf.mxu1 }
 0x1d3   :  { %v507_v51 = vadd.f32 %v506_v30, %v457_v32 }
 0x1da   :  { %v508_v48 = vpop.f32.mrf.mxu1 }
 0x1db   :  { %v509_v54 = vadd.f32 %v508_v48, %v458_v45 }
 0x1dd   :  { %v526_v58 = vpack.c.bf16 %v509_v54, %v507_v51  ;;  %v1638_v54 = vld [vmem:[%s2413_s10 + $0x38] sm:$0xff] }
 0x1de   :  { %731 = vmatpush.bf16.msrb.mxu0 %v1638_v54 }
 0x1df   :  { %589 = vmatmul.bf16.vlgmr.msra.gmra.mxu2 %v526_v58  ;;  %v1637_v58 = vld [vmem:[%s2413_s10 + $0x30] sm:$0xff] }
 0x1e2   :  { %v511_v38 = vpop.f32.mrf.mxu1  ;;  %732 = vmatpush.bf16.msrb.mxu0 %v1637_v58 }
 0x1e3   :  { %v512_v28 = vadd.f32 %v511_v38, %v459_v41  ;;  %v1636_v38 = vld [vmem:[%s2413_s10 + $0x28] sm:$0xff]  ;;  %v1635_v41 = vld [vmem:[%s2413_s10 + $0x20] sm:$0xff] }
 0x1e6   :  { %733 = vmatpush.bf16.msrb.mxu0 %v1636_v38 }
 0x1ea   :  { %v513_v31 = vpop.f32.mrf.mxu1  ;;  %734 = vmatpush.bf16.msrb.mxu0 %v1635_v41 }
 0x1eb   :  { %v514_v37 = vadd.f32 %v513_v31, %v460_v61  ;;  %v1634_v61 = vld [vmem:[%s2413_s10 + $0x18] sm:$0xff]  ;;  %v1633_v31 = vld [vmem:[%s2413_s10 + $0x10] sm:$0xff] }
 0x1ed   :  { %v527_v57 = vpack.c.bf16 %v514_v37, %v512_v28  ;;  %v1632_v28 = vld [vmem:[%s2413_s10 + $0x8] sm:$0xff]  ;;  %v1631_v37 = vld [vmem:[%s2413_s10] sm:$0xff] }
 0x1ee   :  { %735 = vmatpush.bf16.msrb.mxu0 %v1634_v61 }
 0x1ef   :  { %594 = vmatmul.bf16.gmra.mxu2 %v527_v57 }
 0x1f2   :  { %v516_v1 = vpop.f32.mrf.mxu1  ;;  %736 = vmatpush.bf16.msrb.mxu0 %v1633_v31 }
 0x1f3   :  { %v517_v34 = vadd.f32 %v516_v1, %v461_v2 }
 0x1f6   :  { %737 = vmatpush.bf16.msrb.mxu0 %v1632_v28 }
 0x1fa   :  { %v518_v3 = vpop.f32.mrf.mxu1  ;;  %738 = vmatpush.bf16.msrb.mxu0 %v1631_v37 }
 0x1fb   :  { %v519_v50 = vadd.f32 %v518_v3, %v462_v49 }
 0x1fd   :  { %v528_v4 = vpack.c.bf16 %v519_v50, %v517_v34 }
 0x1ff   :  { %599 = vmatmul.bf16.gmra.mxu2 %v528_v4 }
 0x202   :  { %v521_v55 = vpop.f32.mrf.mxu1 }
 0x203   :  { %v522_v52 = vadd.f32 %v521_v55, %v463_v5 }
 0x20a   :  { %v523_v33 = vpop.f32.mrf.mxu1 }
 0x20b   :  { %v524_v8 = vadd.f32 %v523_v33, %v464_v7 }
 0x20d   :  { %v529_v9 = vpack.c.bf16 %v524_v8, %v522_v52 }
 0x20f   :  { %604 = vmatmul.bf16.gmra.mxu2 %v529_v9  ;;  %v1646_v9 = vld [vmem:[%s2415_s12 + $0x38] sm:$0xff] }
 0x210   :  { %836 = vmatpush.bf16.msrb.mxu1 %v1646_v9 }
 0x262   :  { %v590_v59 = vpop.f32.mrf.mxu2 }
 0x263   :  { %v591_v29 = vadd.f32 %v1669_v56, %v590_v59  ;;  %v1645_v59 = vld [vmem:[%s2415_s12 + $0x30] sm:$0xff] }
 0x264   :  { %837 = vmatpush.bf16.msrb.mxu1 %v1645_v59 }
 0x265   :  { %v610_v48 = vmax.f32 %v591_v29, 0.0 }
 0x26a   :  { %v592_v0 = vpop.f32.mrf.mxu2 }
 0x26b   :  { %v593_v24 = vadd.f32 %v1669_v56, %v592_v0 }
 0x26d   :  { %v611_v32 = vmax.f32 %v593_v24, 0.0  ;;  %v1640_v24 = vld [vmem:[%s2415_s12 + $0x8] sm:$0xff] }
 0x26f   :  { %v618_v51 = vpack.c.bf16 %v611_v32, %v610_v48 }
 0x271   :  { %v639_v1 = vunpack.c.l.bf16 %v618_v51  ;;  %v640_v2 = vunpack.c.h.bf16 %v618_v51 }
 0x272   :  { %v595_v10 = vpop.f32.mrf.mxu2 }
 0x273   :  { %v596_v21 = vadd.f32 %v1669_v56, %v595_v10  ;;  %v1644_v10 = vld [vmem:[%s2415_s12 + $0x28] sm:$0xff] }
 0x274   :  { %838 = vmatpush.bf16.msrb.mxu1 %v1644_v10 }
 0x275   :  { %v612_v30 = vmax.f32 %v596_v21, 0.0  ;;  %v1642_v21 = vld [vmem:[%s2415_s12 + $0x18] sm:$0xff] }
 0x27a   :  { %v597_v11 = vpop.f32.mrf.mxu2 }
 0x27b   :  { %v598_v18 = vadd.f32 %v1669_v56, %v597_v11 }
 0x27d   :  { %v613_v26 = vmax.f32 %v598_v18, 0.0 }
 0x27f   :  { %v619_v45 = vpack.c.bf16 %v613_v26, %v612_v30 }
 0x281   :  { %v641_v55 = vunpack.c.l.bf16 %v619_v45  ;;  %v642_v5 = vunpack.c.h.bf16 %v619_v45 }
 0x282   :  { %v600_v14 = vpop.f32.mrf.mxu2 }
 0x283   :  { %v601_v16 = vadd.f32 %v1669_v56, %v600_v14 }
 0x285   :  { %v614_v22 = vmax.f32 %v601_v16, 0.0 }
 0x28a   :  { %v602_v60 = vpop.f32.mrf.mxu2 }
 0x28b   :  { %v603_v13 = vadd.f32 %v1669_v56, %v602_v60  ;;  %v1643_v60 = vld [vmem:[%s2415_s12 + $0x20] sm:$0xff] }
 0x28c   :  { %839 = vmatpush.bf16.msrb.mxu1 %v1643_v60  ;;  %v906_v60 = vpop.permute.xlu1 %905 }
 0x28d   :  { %v615_v19 = vmax.f32 %v603_v13, 0.0 }
 0x28f   :  { %v620_v27 = vpack.c.bf16 %v615_v19, %v614_v22  ;;  %v1641_v22 = vld [vmem:[%s2415_s12 + $0x10] sm:$0xff] }
 0x290   :  { %840 = vmatpush.bf16.msrb.mxu1 %v1642_v21 }
 0x291   :  { %v643_v11 = vunpack.c.l.bf16 %v620_v27  ;;  %v644_v14 = vunpack.c.h.bf16 %v620_v27 }
 0x292   :  { %v605_v53 = vpop.f32.mrf.mxu2 }
 0x293   :  { %v606_v15 = vadd.f32 %v1669_v56, %v605_v53 }
 0x294   :  { %841 = vmatpush.bf16.msrb.mxu1 %v1641_v22 }
 0x295   :  { %v616_v17 = vmax.f32 %v606_v15, 0.0 }
 0x298   :  { %842 = vmatpush.bf16.msrb.mxu1 %v1640_v24 }
 0x29a   :  { %v607_v62 = vpop.f32.mrf.mxu2 }
 0x29b   :  { %v608_v42 = vadd.f32 %v1669_v56, %v607_v62 }
 0x29d   :  { %v617_v6 = vmax.f32 %v608_v42, 0.0 }
 0x29f   :  { %v2071_v20 = vpack.c.bf16 %v617_v6, %v616_v17 }
 0x2a1   :  { %651 = vmatpush.bf16.msra.mxu3 %v2071_v20  ;;  %v645_v42 = vunpack.c.l.bf16 %v2071_v20  ;;  %v646_v16 = vunpack.c.h.bf16 %v2071_v20  ;;  %v1639_v20 = vld [vmem:[%s2415_s12] sm:$0xff]  ;;  %s1739_s12 = smov [#allocation2]  }
 0x2a2   :  { %843 = vmatpush.bf16.msrb.mxu1 %v1639_v20 }
 0x2a5   :  { %652 = vmatpush.bf16.msra.mxu3 %v620_v27  ;;  %v1670_v27 = vld [vmem:[%s2414_s11] ss:$0 sm:$0xff] }
 0x2a9   :  { %653 = vmatpush.bf16.msra.mxu3 %v619_v45 }
 0x2ad   :  { %654 = vmatpush.bf16.msra.mxu3 %v618_v51 }
 0x2b0   :  { %1507 = vmatmul.msk.bf16.vlgmr.msra.gmra.mxu3 %vm167_vm2, %v2017_v63 }
 0x2c0   :  { %1508 = vmatmul.msk.bf16.gmra.mxu3 %vm167_vm2, %v2024_v12 }
 0x2d0   :  { %1509 = vmatmul.msk.bf16.gmra.mxu3 %vm167_vm2, %v2043_v23 }
 0x2e0   :  { %1510 = vmatmul.msk.bf16.gmra.mxu3 %vm167_vm2, %v2053_v25 }
 0x333   :  { %v656_v57 = vpop.f32.mrf.mxu3 }
 0x334   :  { %v657_v3 = vadd.f32 %v656_v57, %v639_v1 }
 0x33b   :  { %v658_v49 = vpop.f32.mrf.mxu3 }
 0x33c   :  { %v659_v34 = vadd.f32 %v658_v49, %v640_v2 }
 0x33e   :  { %v676_v50 = vpack.c.bf16 %v659_v34, %v657_v3 }
 0x340   :  { %739 = vmatmul.bf16.vlgmr.msrb.gmra.mxu0 %v676_v50 }
 0x343   :  { %v661_v4 = vpop.f32.mrf.mxu3 }
 0x344   :  { %v662_v33 = vadd.f32 %v661_v4, %v641_v55 }
 0x34b   :  { %v663_v7 = vpop.f32.mrf.mxu3 }
 0x34c   :  { %v664_v52 = vadd.f32 %v663_v7, %v642_v5 }
 0x34e   :  { %v677_v8 = vpack.c.bf16 %v664_v52, %v662_v33 }
 0x350   :  { %744 = vmatmul.bf16.gmra.mxu0 %v677_v8 }
 0x353   :  { %v666_v0 = vpop.f32.mrf.mxu3 }
 0x354   :  { %v667_v56 = vadd.f32 %v666_v0, %v643_v11 }
 0x35b   :  { %v668_v53 = vpop.f32.mrf.mxu3 }
 0x35c   :  { %v669_v15 = vadd.f32 %v668_v53, %v644_v14  ;;  %v911_v14 = vpop.permute.xlu2 %910 }
 0x35e   :  { %v678_v62 = vpack.c.bf16 %v669_v15, %v667_v56  ;;  %v896_v56 = vpop.permute.xlu0 %895 }
 0x360   :  { %749 = vmatmul.bf16.gmra.mxu0 %v678_v62 }
 0x363   :  { %v671_v13 = vpop.f32.mrf.mxu3 }
 0x364   :  { %v672_v6 = vadd.f32 %v671_v13, %v645_v42  ;;  %v886_v15 = vpop.permute.xlu2 %885 }
 0x36b   :  { %v673_v17 = vpop.f32.mrf.mxu3 }
 0x36c   :  { %v674_v18 = vadd.f32 %v673_v17, %v646_v16  ;;  %v901_v16 = vpop.permute.xlu1 %900  ;;  %v881_v20 = vpop.permute.xlu2 %880 }
 0x36e   :  { %v679_v19 = vpack.c.bf16 %v674_v18, %v672_v6 }
 0x370   :  { %754 = vmatmul.bf16.gmra.mxu0 %v679_v19  ;;  %v891_v19 = vpop.permute.xlu0 %890 }
 0x3bd   :  { %v740_v26 = vpop.f32.mrf.mxu0 }
 0x3be   :  { %v741_v29 = vadd.f32 %v1670_v27, %v740_v26 }
 0x3c0   :  { %v760_v45 = vmax.f32 %v741_v29, 0.0  ;;  %v876_v29 = vpop.permute.xlu1 %875 }
 0x3c5   :  { %v742_v30 = vpop.f32.mrf.mxu0 }
 0x3c6   :  { %v743_v32 = vadd.f32 %v1670_v27, %v742_v30 }
 0x3c8   :  { %v761_v48 = vmax.f32 %v743_v32, 0.0 }
 0x3ca   :  { %v768_v51 = vpack.c.bf16 %v761_v48, %v760_v45  ;;  %v1654_v45 = vld [vmem:[%s2416_s13 + $0x38] sm:$0xff]  ;;  %v1653_v48 = vld [vmem:[%s2416_s13 + $0x30] sm:$0xff] }
 0x3cb   :  { %1026 = vmatpush.bf16.msrb.mxu2 %v1654_v45 }
 0x3cc   :  { %844 = vmatmul.bf16.vlgmr.msrb.gmra.mxu1 %v768_v51  ;;  %v1652_v51 = vld [vmem:[%s2416_s13 + $0x28] sm:$0xff] }
 0x3cd   :  { %v745_v54 = vpop.f32.mrf.mxu0 }
 0x3ce   :  { %v746_v58 = vadd.f32 %v1670_v27, %v745_v54  ;;  %v1649_v54 = vld [vmem:[%s2416_s13 + $0x10] sm:$0xff] }
 0x3cf   :  { %1027 = vmatpush.bf16.msrb.mxu2 %v1653_v48 }
 0x3d0   :  { %v762_v61 = vmax.f32 %v746_v58, 0.0  ;;  %v1648_v58 = vld [vmem:[%s2416_s13 + $0x8] sm:$0xff] }
 0x3d3   :  { %1028 = vmatpush.bf16.msrb.mxu2 %v1652_v51 }
 0x3d5   :  { %v747_v38 = vpop.f32.mrf.mxu0 }
 0x3d6   :  { %v748_v41 = vadd.f32 %v1670_v27, %v747_v38  ;;  %v1647_v38 = vld [vmem:[%s2416_s13] sm:$0xff] }
 0x3d8   :  { %v763_v31 = vmax.f32 %v748_v41, 0.0 }
 0x3da   :  { %v769_v28 = vpack.c.bf16 %v763_v31, %v762_v61 }
 0x3dc   :  { %849 = vmatmul.bf16.gmra.mxu1 %v769_v28 }
 0x3dd   :  { %v750_v37 = vpop.f32.mrf.mxu0 }
 0x3de   :  { %v751_v57 = vadd.f32 %v1670_v27, %v750_v37 }
 0x3e0   :  { %v764_v49 = vmax.f32 %v751_v57, 0.0 }
 0x3e5   :  { %v752_v1 = vpop.f32.mrf.mxu0 }
 0x3e6   :  { %v753_v2 = vadd.f32 %v1670_v27, %v752_v1 }
 0x3e8   :  { %v765_v3 = vmax.f32 %v753_v2, 0.0 }
 0x3ea   :  { %v770_v34 = vpack.c.bf16 %v765_v3, %v764_v49  ;;  %v1170_v49 = vmul.f32 %v1936_v44, %v1936_v44  ;;  %v1169_v3 = vmul.f32 %v1931_v43, %v1931_v43  ;;  %v1172_v44 = vmul.f32 %v1924_v40, %v1924_v40 }
 0x3eb   :  { %v1167_v43 = vmul.f32 %v1943_v46, %v1943_v46 }
 0x3ec   :  { %854 = vmatmul.bf16.gmra.mxu1 %v770_v34  ;;  %1181 = vadd.xlane.f32.xlu0 %v1170_v49 }
 0x3ed   :  { %v755_v50 = vpop.f32.mrf.mxu0  ;;  %1179 = vadd.xlane.f32.xlu1 %v1169_v3  ;;  %1175 = vadd.xlane.f32.xlu2 %v1167_v43 }
 0x3ee   :  { %v756_v4 = vadd.f32 %v1670_v27, %v755_v50 }
 0x3f0   :  { %v766_v7 = vmax.f32 %v756_v4, 0.0 }
 0x3f5   :  { %v757_v55 = vpop.f32.mrf.mxu0  ;;  %1185 = vadd.xlane.f32.xlu1 %v1172_v44 }
 0x3f6   :  { %v758_v5 = vadd.f32 %v1670_v27, %v757_v55 }
 0x3f8   :  { %v767_v33 = vmax.f32 %v758_v5, 0.0 }
 0x3fa   :  { %v771_v52 = vpack.c.bf16 %v767_v33, %v766_v7 }
 0x3fc   :  { %859 = vmatmul.bf16.gmra.mxu1 %v771_v52 }
 0x449   :  { %v845_v8 = vpop.f32.mrf.mxu1 }
 0x44a   :  { %v913_v30 = vmul.f32 %v876_v29, %v845_v8  ;;  %v1174_v29 = vmul.f32 %v1909_v36, %v1909_v36 }
 0x451   :  { %v847_v9 = vpop.f32.mrf.mxu1 }
 0x452   :  { %v914_v26 = vmul.f32 %v881_v20, %v847_v9 }
 0x454   :  { %v938_v32 = vpack.c.bf16 %v914_v26, %v913_v30 }
 0x459   :  { %v850_v59 = vpop.f32.mrf.mxu1 }
 0x45a   :  { %v915_v24 = vmul.f32 %v886_v15, %v850_v59  ;;  %v1168_v59 = vmul.f32 %v1948_v47, %v1948_v47 }
 0x45c   :  { %1177 = vadd.xlane.f32.xlu2 %v1168_v59 }
 0x45f   :  { %v1182_v51 = vpop.xlane.xlu0 %1181 }
 0x461   :  { %v852_v0 = vpop.f32.mrf.mxu1 }
 0x462   :  { %v916_v21 = vmul.f32 %v891_v19, %v852_v0  ;;  %v1171_v0 = vmul.f32 %v1919_v39, %v1919_v39 }
 0x464   :  { %v939_v27 = vpack.c.bf16 %v916_v21, %v915_v24  ;;  %1183 = vadd.xlane.f32.xlu2 %v1171_v0 }
 0x469   :  { %v855_v10 = vpop.f32.mrf.mxu1 }
 0x46a   :  { %v917_v18 = vmul.f32 %v896_v56, %v855_v10  ;;  %v1671_v10 = vld [vmem:[%s2417_s14] ss:$0 sm:$0xff] }
 0x471   :  { %v857_v11 = vpop.f32.mrf.mxu1 }
 0x472   :  { %v918_v17 = vmul.f32 %v901_v16, %v857_v11 }
 0x474   :  { %v940_v22 = vpack.c.bf16 %v918_v17, %v917_v18 }
 0x479   :  { %v860_v53 = vpop.f32.mrf.mxu1 }
 0x47a   :  { %v2135_v13 = vmul.f32 %v906_v60, %v860_v53 }
 0x481   :  { %v862_v62 = vpop.f32.mrf.mxu1 }
 0x482   :  { %v2137_v42 = vmul.f32 %v911_v14, %v862_v62 }
 0x484   :  { %v941_v6 = vpack.c.bf16 %v2137_v42, %v2135_v13 }
 0x486   :  { %946 = vmatpush.bf16.msrb.mxu3 %v941_v6 }
 0x48a   :  { %947 = vmatpush.bf16.msrb.mxu3 %v940_v22 }
 0x48e   :  { %948 = vmatpush.bf16.msrb.mxu3 %v939_v27 }
 0x492   :  { %949 = vmatpush.bf16.msrb.mxu3 %v938_v32  ;;  %v1176_v32 = vpop.xlane.xlu2 %1175 }
 0x493   :  { %v1191_v45 = vmax.f32 %v1176_v32, 1e-24 }
 0x495   :  { %1575 = vmatmul.msk.bf16.vlgmr.msrb.gmra.mxu3 %vm167_vm2, %v2017_v63  ;;  %v1651_v63 = vld [vmem:[%s2416_s13 + $0x20] sm:$0xff]  ;;  %1672 = vrsqrt.f32 %v1191_v45  ;;  %vm1205_vm9 = vweird.f32 %v1191_v45 }
 0x496   :  { %1029 = vmatpush.bf16.msrb.mxu2 %v1651_v63 }
 0x4a5   :  { %1576 = vmatmul.msk.bf16.gmra.mxu3 %vm167_vm2, %v2024_v12  ;;  %v1650_v12 = vld [vmem:[%s2416_s13 + $0x18] sm:$0xff] }
 0x4a6   :  { %1030 = vmatpush.bf16.msrb.mxu2 %v1650_v12  ;;  %v1673_v12 = vpop.eup %1672 }
 0x4a7   :  { %vm1206_vm10 = vweird.f32 %v1673_v12 }
 0x4a8   :  { %vm2240_vm11 = vmor %vm1205_vm9, %vm1206_vm10 }
 0x4aa   :  { %1031 = vmatpush.bf16.msrb.mxu2 %v1649_v54  ;;  %v1200_v54 = vmul.f32 %v1673_v12, %v1191_v45 }
 0x4ae   :  { %1032 = vmatpush.bf16.msrb.mxu2 %v1648_v58 }
 0x4b2   :  { %1033 = vmatpush.bf16.msrb.mxu2 %v1647_v38 }
 0x4b5   :  { %1577 = vmatmul.msk.bf16.gmra.mxu3 %vm167_vm2, %v2043_v23 }
 0x4c5   :  { %1578 = vmatmul.msk.bf16.gmra.mxu3 %vm167_vm2, %v2053_v25 }
 0x4cf   :  { %v1178_v48 = vpop.xlane.xlu2 %1177 }
 0x4d0   :  { %v1192_v63 = vmax.f32 %v1178_v48, 1e-24 }
 0x4d2   :  { %1674 = vrsqrt.f32 %v1192_v63  ;;  %vm1215_vm13 = vweird.f32 %v1192_v63 }
 0x518   :  { %v951_v23 = vpop.f32.mrf.mxu3 }
 0x519   :  { %v952_v61 = vadd.f32 %v951_v23, %v913_v30  ;;  %v1201_v23 = vmul.f32 %v1673_v12, %v1200_v54  ;;  %v1707_v54 = vld [vmem:[%s2404_s1 + $0x8] sm:$0xff] }
 0x520   :  { %v953_v41 = vpop.f32.mrf.mxu3 }
 0x521   :  { %v954_v31 = vadd.f32 %v953_v41, %v914_v26  ;;  %v2228_v41 = vpop.eup %1674 }
 0x522   :  { %vm1216_vm15 = vweird.f32 %v2228_v41 }
 0x523   :  { %v971_v25 = vpack.c.bf16 %v954_v31, %v952_v61  ;;  %v1202_v31 = vmul.f32 0.5, %v1201_v23  ;;  %vm2263_vm1 = vmor %vm1215_vm13, %vm1216_vm15 }
 0x525   :  { %1034 = vmatmul.bf16.vlgmr.msrb.gmra.mxu2 %v971_v25  ;;  %v1210_v25 = vmul.f32 %v2228_v41, %v1192_v63 }
 0x528   :  { %v956_v28 = vpop.f32.mrf.mxu3 }
 0x529   :  { %v957_v57 = vadd.f32 %v956_v28, %v915_v24  ;;  %v1173_v24 = vmul.f32 %v1904_v35, %v1904_v35  ;;  %v1180_v35 = vpop.xlane.xlu1 %1179  ;;  %v2232_v28 = vmax.f32 %v1182_v51, 1e-24 }
 0x52a   :  { %v2226_v38 = vmax.f32 %v1180_v35, 1e-24 }
 0x52b   :  { %vm1235_vm10 = vweird.f32 %v2232_v28 }
 0x52c   :  { %vm1225_vm4 = vweird.f32 %v2226_v38 }
 0x530   :  { %v958_v37 = vpop.f32.mrf.mxu3 }
 0x531   :  { %v959_v1 = vadd.f32 %v958_v37, %v916_v21  ;;  %v1186_v58 = vpop.xlane.xlu1 %1185  ;;  %v1203_v37 = vsub.f32 1.5, %v1202_v31 }
 0x533   :  { %v972_v2 = vpack.c.bf16 %v959_v1, %v957_v57  ;;  %v1211_v57 = vmul.f32 %v2228_v41, %v1210_v25 }
 0x535   :  { %1039 = vmatmul.bf16.gmra.mxu2 %v972_v2 }
 0x538   :  { %v961_v34 = vpop.f32.mrf.mxu3 }
 0x539   :  { %v962_v4 = vadd.f32 %v961_v34, %v917_v18 }
 0x540   :  { %v963_v50 = vpop.f32.mrf.mxu3 }
 0x541   :  { %v964_v55 = vadd.f32 %v963_v50, %v918_v17 }
 0x543   :  { %v973_v5 = vpack.c.bf16 %v964_v55, %v962_v4  ;;  %v1212_v4 = vmul.f32 0.5, %v1211_v57  ;;  %v1184_v55 = vpop.xlane.xlu2 %1183 }
 0x545   :  { %1044 = vmatmul.bf16.gmra.mxu2 %v973_v5  ;;  %v1204_v5 = vmul.f32 %v1673_v12, %v1203_v37  ;;  %v1213_v44 = vsub.f32 1.5, %v1212_v4 }
 0x547   :  { %v1208_v59 = vsel %vm2240_vm11, %v1673_v12, %v1204_v5 }
 0x548   :  { %v966_v7 = vpop.f32.mrf.mxu3 }
 0x549   :  { %v967_v52 = vadd.f32 %v966_v7, %v2135_v13 }
 0x550   :  { %v968_v33 = vpop.f32.mrf.mxu3 }
 0x551   :  { %v969_v8 = vadd.f32 %v968_v33, %v2137_v42 }
 0x553   :  { %v974_v9 = vpack.c.bf16 %v969_v8, %v967_v52  ;;  %v2244_v8 = vmax.f32 %v1184_v55, 1e-24 }
 0x555   :  { %1049 = vmatmul.bf16.gmra.mxu2 %v974_v9 }
 0x5a8   :  { %v1035_v11 = vpop.f32.mrf.mxu2 }
 0x5a9   :  { %v2190_v14 = vadd.f32 %v1671_v10, %v1035_v11 }
 0x5ab   :  { %v1055_v40 = vmul.f32 %v2190_v14, %v2190_v14 }
 0x5ad   :  { %1063 = vadd.xlane.f32.xlu0 %v1055_v40 }
 0x5b0   :  { %v1037_v46 = vpop.f32.mrf.mxu2 }
 0x5b1   :  { %v2194_v60 = vadd.f32 %v1671_v10, %v1037_v46 }
 0x5b3   :  { %v1056_v47 = vmul.f32 %v2194_v60, %v2194_v60 }
 0x5b5   :  { %1065 = vadd.xlane.f32.xlu1 %v1056_v47 }
 0x5b8   :  { %v1040_v39 = vpop.f32.mrf.mxu2 }
 0x5b9   :  { %v2198_v53 = vadd.f32 %v1671_v10, %v1040_v39  ;;  %v1706_v39 = vld [vmem:[%s2404_s1] sm:$0xff] }
 0x5bb   :  { %v1057_v56 = vmul.f32 %v2198_v53, %v2198_v53 }
 0x5bd   :  { %1067 = vadd.xlane.f32.xlu0 %v1057_v56  ;;  %v1287_v56 = vmul.f32 %v1706_v39, %v1208_v59 }
 0x5c0   :  { %v1042_v15 = vpop.f32.mrf.mxu2 }
 0x5c1   :  { %v2202_v62 = vadd.f32 %v1671_v10, %v1042_v15 }
 0x5c3   :  { %v1058_v13 = vmul.f32 %v2202_v62, %v2202_v62 }
 0x5c5   :  { %1069 = vadd.xlane.f32.xlu2 %v1058_v13 }
 0x5c8   :  { %v1045_v42 = vpop.f32.mrf.mxu2 }
 0x5c9   :  { %v2206_v16 = vadd.f32 %v1671_v10, %v1045_v42  ;;  %v1214_v42 = vmul.f32 %v2228_v41, %v1213_v44 }
 0x5cb   :  { %v1059_v17 = vmul.f32 %v2206_v16, %v2206_v16  ;;  %v1218_v32 = vsel %vm2263_vm1, %v2228_v41, %v1214_v42  ;;  %vm1245_vm1 = vweird.f32 %v2244_v8 }
 0x5cd   :  { %1071 = vadd.xlane.f32.xlu1 %v1059_v17 }
 0x5d0   :  { %v1047_v6 = vpop.f32.mrf.mxu2 }
 0x5d1   :  { %v2210_v18 = vadd.f32 %v1671_v10, %v1047_v6 }
 0x5d3   :  { %v1060_v19 = vmul.f32 %v2210_v18, %v2210_v18 }
 0x5d5   :  { %1073 = vadd.xlane.f32.xlu0 %v1060_v19 }
 0x5d8   :  { %v1050_v21 = vpop.f32.mrf.mxu2 }
 0x5d9   :  { %v2214_v22 = vadd.f32 %v1671_v10, %v1050_v21 }
 0x5db   :  { %v1061_v20 = vmul.f32 %v2214_v22, %v2214_v22 }
 0x5dd   :  { %1075 = vadd.xlane.f32.xlu2 %v1061_v20  ;;  %1187 = vadd.xlane.f32.xlu0 %v1173_v24 }
 0x5e0   :  { %v1052_v26 = vpop.f32.mrf.mxu2 }
 0x5e1   :  { %v2220_v27 = vadd.f32 %v1671_v10, %v1052_v26  ;;  %v2268_v26 = vmax.f32 %v1186_v58, 1e-24  ;;  %v1288_v58 = vmul.f32 %v1707_v54, %v1218_v32 }
 0x5e3   :  { %v1062_v30 = vmul.f32 %v2220_v27, %v2220_v27 }
 0x5e5   :  { %1189 = vadd.xlane.f32.xlu2 %v1174_v29  ;;  %1077 = vadd.xlane.f32.xlu1 %v1062_v30 }
 0x620   :  { %v1064_v36 = vpop.xlane.xlu0 %1063 }
 0x621   :  { %v1079_v61 = vmax.f32 %v1064_v36, 1e-24 }
 0x623   :  { %1676 = vrsqrt.f32 %v1079_v61  ;;  %vm1093_vm14 = vweird.f32 %v1079_v61 }
 0x624   :  { %1678 = vrsqrt.f32 %v2226_v38 }
 0x628   :  { %v1066_v1 = vpop.xlane.xlu1 %1065 }
 0x629   :  { %v1677_v2 = vpop.eup %1676  ;;  %v1080_v49 = vmax.f32 %v1066_v1, 1e-24 }
 0x62a   :  { %v2235_v3 = vpop.eup %1678  ;;  %v1088_v34 = vmul.f32 %v1677_v2, %v1079_v61  ;;  %vm1094_vm12 = vweird.f32 %v1677_v2 }
 0x62b   :  { %1680 = vrsqrt.f32 %v1080_v49  ;;  %v1220_v7 = vmul.f32 %v2235_v3, %v2226_v38  ;;  %vm1095_vm0 = vmor %vm1093_vm14, %vm1094_vm12  ;;  %vm1103_vm3 = vweird.f32 %v1080_v49  ;;  %vm1226_vm6 = vweird.f32 %v2235_v3 }
 0x62c   :  { %1682 = vrsqrt.f32 %v2232_v28  ;;  %v1089_v50 = vmul.f32 %v1677_v2, %v1088_v34  ;;  %vm2290_vm7 = vmor %vm1225_vm4, %vm1226_vm6  ;;  %vm1255_vm6 = vweird.f32 %v2268_v26 }
 0x62d   :  { %v1221_v10 = vmul.f32 %v2235_v3, %v1220_v7 }
 0x62e   :  { %v1090_v52 = vmul.f32 0.5, %v1089_v50 }
 0x62f   :  { %v1222_v21 = vmul.f32 0.5, %v1221_v10 }
 0x630   :  { %v1091_v9 = vsub.f32 1.5, %v1090_v52  ;;  %v1068_v43 = vpop.xlane.xlu0 %1067 }
 0x631   :  { %v1681_v0 = vpop.eup %1680  ;;  %v2249_v11 = vmax.f32 %v1068_v43, 1e-24  ;;  %v1708_v43 = vld [vmem:[%s2404_s1 + $0x10] sm:$0xff] }
 0x632   :  { %v2251_v40 = vpop.eup %1682  ;;  %v1098_v46 = vmul.f32 %v1681_v0, %v1080_v49  ;;  %v1092_v47 = vmul.f32 %v1677_v2, %v1091_v9  ;;  %vm1104_vm2 = vweird.f32 %v1681_v0 }
 0x633   :  { %1684 = vrsqrt.f32 %v2249_v11  ;;  %v1230_v17 = vmul.f32 %v2251_v40, %v2232_v28  ;;  %vm1105_vm5 = vmor %vm1103_vm3, %vm1104_vm2  ;;  %vm1113_vm9 = vweird.f32 %v2249_v11  ;;  %vm1236_vm11 = vweird.f32 %v2251_v40 }
 0x634   :  { %v1099_v15 = vmul.f32 %v1681_v0, %v1098_v46  ;;  %1686 = vrsqrt.f32 %v2244_v8  ;;  %v1096_v13 = vsel %vm1095_vm0, %v1677_v2, %v1092_v47  ;;  %vm2311_vm13 = vmor %vm1235_vm10, %vm1236_vm11 }
 0x635   :  { %v1279_v19 = vmul.f32 %v1096_v13, %v2190_v14  ;;  %v1231_v35 = vmul.f32 %v2251_v40, %v1230_v17  ;;  %v1223_v14 = vsub.f32 1.5, %v1222_v21 }
 0x636   :  { %v1100_v24 = vmul.f32 0.5, %v1099_v15 }
 0x637   :  { %v1295_v20 = vmul.f32 %v1287_v56, %v1279_v19  ;;  %v1232_v41 = vmul.f32 0.5, %v1231_v35  ;;  %v1224_v25 = vmul.f32 %v2235_v3, %v1223_v14 }
 0x638   :  { %v1101_v29 = vsub.f32 1.5, %v1100_v24  ;;  %v1070_v30 = vpop.xlane.xlu2 %1069 }
 0x639   :  { %v1685_v45 = vpop.eup %1684  ;;  %v2274_v48 = vmax.f32 %v1070_v30, 1e-24  ;;  %1303 = vadd.xlane.f32.xlu0 %v1295_v20  ;;  %v1233_v34 = vsub.f32 1.5, %v1232_v41  ;;  %v1228_v7 = vsel %vm2290_vm7, %v2235_v3, %v1224_v25 }
 0x63a   :  { %v2276_v51 = vpop.eup %1686  ;;  %v1108_v63 = vmul.f32 %v1685_v45, %v2249_v11  ;;  %v1102_v12 = vmul.f32 %v1681_v0, %v1101_v29  ;;  %vm1114_vm8 = vweird.f32 %v1685_v45  ;;  %v1289_v59 = vmul.f32 %v1708_v43, %v1228_v7  ;;  %v1711_v43 = vld [vmem:[%s2404_s1 + $0x28] sm:$0xff] }
 0x63b   :  { %1688 = vrsqrt.f32 %v2274_v48  ;;  %v1240_v61 = vmul.f32 %v2276_v51, %v2244_v8  ;;  %vm1115_vm12 = vmor %vm1113_vm9, %vm1114_vm8  ;;  %v1234_v3 = vmul.f32 %v2251_v40, %v1233_v34  ;;  %vm1123_vm15 = vweird.f32 %v2274_v48 }
 0x63c   :  { %1690 = vrsqrt.f32 %v2268_v26  ;;  %v1109_v23 = vmul.f32 %v1685_v45, %v1108_v63  ;;  %v1106_v36 = vsel %vm1105_vm5, %v1681_v0, %v1102_v12  ;;  %vm1246_vm2 = vweird.f32 %v2276_v51 }
 0x63d   :  { %v1280_v38 = vmul.f32 %v1106_v36, %v2194_v60  ;;  %v1241_v50 = vmul.f32 %v2276_v51, %v1240_v61  ;;  %v1238_v15 = vsel %vm2311_vm13, %v2251_v40, %v1234_v3  ;;  %v1709_v40 = vld [vmem:[%s2404_s1 + $0x18] sm:$0xff]  ;;  %vm2327_vm3 = vmor %vm1245_vm1, %vm1246_vm2 }
 0x63e   :  { %v1110_v31 = vmul.f32 0.5, %v1109_v23  ;;  %v1290_v20 = vmul.f32 %v1709_v40, %v1238_v15 }
 0x63f   :  { %v1296_v57 = vmul.f32 %v1288_v58, %v1280_v38  ;;  %v1242_v0 = vmul.f32 0.5, %v1241_v50  ;;  %v1710_v38 = vld [vmem:[%s2404_s1 + $0x20] sm:$0xff] }
 0x640   :  { %v1111_v1 = vsub.f32 1.5, %v1110_v31  ;;  %v1072_v2 = vpop.xlane.xlu1 %1071 }
 0x641   :  { %v1689_v49 = vpop.eup %1688  ;;  %v1083_v4 = vmax.f32 %v1072_v2, 1e-24  ;;  %1305 = vadd.xlane.f32.xlu1 %v1296_v57  ;;  %v1243_v13 = vsub.f32 1.5, %v1242_v0 }
 0x642   :  { %v2295_v55 = vpop.eup %1690  ;;  %v1118_v60 = vmul.f32 %v1689_v49, %v2274_v48  ;;  %v1112_v5 = vmul.f32 %v1685_v45, %v1111_v1  ;;  %vm1124_vm14 = vweird.f32 %v1689_v49 }
 0x643   :  { %1692 = vrsqrt.f32 %v1083_v4  ;;  %v1250_v9 = vmul.f32 %v2295_v55, %v2268_v26  ;;  %vm1125_vm0 = vmor %vm1123_vm15, %vm1124_vm14  ;;  %v1244_v30 = vmul.f32 %v2276_v51, %v1243_v13  ;;  %vm1133_vm5 = vweird.f32 %v1083_v4 }
 0x644   :  { %v1119_v33 = vmul.f32 %v1689_v49, %v1118_v60  ;;  %v1116_v52 = vsel %vm1115_vm12, %v1685_v45, %v1112_v5  ;;  %vm1256_vm8 = vweird.f32 %v2295_v55 }
 0x645   :  { %v1281_v44 = vmul.f32 %v1116_v52, %v2198_v53  ;;  %v1251_v53 = vmul.f32 %v2295_v55, %v1250_v9  ;;  %v1248_v23 = vsel %vm2327_vm3, %v2276_v51, %v1244_v30  ;;  %vm2341_vm9 = vmor %vm1255_vm6, %vm1256_vm8  ;;  %v1719_v51 = vld [vmem:[%s2409_s6 + $0x28] sm:$0xff] }
 0x646   :  { %v1120_v10 = vmul.f32 0.5, %v1119_v33  ;;  %v1291_v31 = vmul.f32 %v1710_v38, %v1248_v23 }
 0x647   :  { %v1297_v11 = vmul.f32 %v1289_v59, %v1281_v44  ;;  %v1252_v21 = vmul.f32 0.5, %v1251_v53 }
 0x648   :  { %v1121_v46 = vsub.f32 1.5, %v1120_v10  ;;  %v1074_v47 = vpop.xlane.xlu0 %1073 }
 0x649   :  { %v1693_v39 = vpop.eup %1692  ;;  %v1084_v56 = vmax.f32 %v1074_v47, 1e-24  ;;  %1307 = vadd.xlane.f32.xlu2 %v1297_v11  ;;  %v1253_v63 = vsub.f32 1.5, %v1252_v21 }
 0x64a   :  { %v1128_v42 = vmul.f32 %v1693_v39, %v1083_v4  ;;  %v1122_v17 = vmul.f32 %v1689_v49, %v1121_v46  ;;  %vm1134_vm4 = vweird.f32 %v1693_v39 }
 0x64b   :  { %1694 = vrsqrt.f32 %v1084_v56  ;;  %vm1135_vm7 = vmor %vm1133_vm5, %vm1134_vm4  ;;  %v1254_v37 = vmul.f32 %v2295_v55, %v1253_v63  ;;  %vm1143_vm11 = vweird.f32 %v1084_v56  ;;  %v1714_v63 = vld [vmem:[%s2409_s6] sm:$0xff] }
 0x64c   :  { %v1129_v6 = vmul.f32 %v1693_v39, %v1128_v42  ;;  %v1126_v19 = vsel %vm1125_vm0, %v1689_v49, %v1122_v17 }
 0x64d   :  { %v1282_v24 = vmul.f32 %v1126_v19, %v2202_v62  ;;  %v1258_v5 = vsel %vm2341_vm9, %v2295_v55, %v1254_v37  ;;  %v1712_v19 = vld [vmem:[%s2404_s1 + $0x30] sm:$0xff]  ;;  %vm1359_vm9 = vcmask 7168  }
 0x64e   :  { %v1130_v29 = vmul.f32 0.5, %v1129_v6  ;;  %v1292_v59 = vmul.f32 %v1711_v43, %v1258_v5 }
 0x64f   :  { %v1298_v8 = vmul.f32 %v1290_v20, %v1282_v24 }
 0x650   :  { %v1131_v45 = vsub.f32 1.5, %v1130_v29  ;;  %v1076_v35 = vpop.xlane.xlu2 %1075  ;;  %v1188_v48 = vpop.xlane.xlu0 %1187 }
 0x651   :  { %v1695_v14 = vpop.eup %1694  ;;  %v1085_v62 = vmax.f32 %v1076_v35, 1e-24  ;;  %v1197_v12 = vmax.f32 %v1188_v48, 1e-24  ;;  %1309 = vadd.xlane.f32.xlu0 %v1298_v8 }
 0x652   :  { %v1138_v54 = vmul.f32 %v1695_v14, %v1084_v56  ;;  %v1132_v58 = vmul.f32 %v1693_v39, %v1131_v45  ;;  %vm1144_vm10 = vweird.f32 %v1695_v14  ;;  %v1713_v45 = vld [vmem:[%s2404_s1 + $0x38] sm:$0xff] }
 0x653   :  { %1696 = vrsqrt.f32 %v1085_v62  ;;  %vm1145_vm12 = vmor %vm1143_vm11, %vm1144_vm10  ;;  %vm1265_vm14 = vweird.f32 %v1197_v12  ;;  %vm1153_vm0 = vweird.f32 %v1085_v62 }
 0x654   :  { %v1139_v36 = vmul.f32 %v1695_v14, %v1138_v54  ;;  %1698 = vrsqrt.f32 %v1197_v12  ;;  %v1136_v41 = vsel %vm1135_vm7, %v1693_v39, %v1132_v58 }
 0x655   :  { %v1283_v61 = vmul.f32 %v1136_v41, %v2206_v16 }
 0x656   :  { %v1140_v25 = vmul.f32 0.5, %v1139_v36  ;;  %v1717_v36 = vld [vmem:[%s2409_s6 + $0x18] sm:$0xff] }
 0x657   :  { %v1299_v26 = vmul.f32 %v1291_v31, %v1283_v61  ;;  %v1389_v41 = vsel %vm1359_vm9, %v1717_v36, 0.0  ;;  %v1718_v31 = vld [vmem:[%s2409_s6 + $0x20] sm:$0xff] }
 0x658   :  { %v1141_v57 = vsub.f32 1.5, %v1140_v25  ;;  %v1190_v1 = vpop.xlane.xlu2 %1189  ;;  %v1078_v2 = vpop.xlane.xlu1 %1077  ;;  %v1391_v25 = vsel %vm1359_vm9, %v1718_v31, 0.0 }
 0x659   :  { %v1697_v49 = vpop.eup %1696  ;;  %v1198_v34 = vmax.f32 %v1190_v1, 1e-24  ;;  %v1086_v16 = vmax.f32 %v1078_v2, 1e-24  ;;  %1311 = vadd.xlane.f32.xlu1 %v1299_v26  ;;  %v1393_v26 = vsel %vm1359_vm9, %v1719_v51, 0.0  ;;  %v1720_v1 = vld [vmem:[%s2409_s6 + $0x30] sm:$0xff] }
 0x65a   :  { %v1699_v50 = vpop.eup %1698  ;;  %v1148_v4 = vmul.f32 %v1697_v49, %v1085_v62  ;;  %v1142_v60 = vmul.f32 %v1695_v14, %v1141_v57  ;;  %vm1154_vm13 = vweird.f32 %v1697_v49  ;;  %v1384_v62 = vsel %vm1359_vm9, %v1714_v63, 0.0 }
 0x65b   :  { %v1260_v7 = vmul.f32 %v1699_v50, %v1197_v12  ;;  %1700 = vrsqrt.f32 %v1198_v34  ;;  %vm1266_vm15 = vweird.f32 %v1699_v50  ;;  %vm1155_vm1 = vmor %vm1153_vm0, %vm1154_vm13  ;;  %vm1275_vm5 = vweird.f32 %v1198_v34  ;;  %v1715_v12 = vld [vmem:[%s2409_s6 + $0x8] sm:$0xff] }
 0x65c   :  { %v1149_v33 = vmul.f32 %v1697_v49, %v1148_v4  ;;  %1702 = vrsqrt.f32 %v1086_v16  ;;  %v1146_v52 = vsel %vm1145_vm12, %v1695_v14, %v1142_v60  ;;  %vm1267_vm2 = vmor %vm1265_vm14, %vm1266_vm15  ;;  %vm1163_vm7 = vweird.f32 %v1086_v16 }
 0x65d   :  { %v1261_v9 = vmul.f32 %v1699_v50, %v1260_v7  ;;  %v1284_v44 = vmul.f32 %v1146_v52, %v2210_v18  ;;  %v1385_v54 = vsel %vm1359_vm9, %v1715_v12, 0.0  ;;  %v1395_v2 = vsel %vm1359_vm9, %v1720_v1, 0.0 }
 0x65e   :  { %v1150_v3 = vmul.f32 0.5, %v1149_v33  ;;  %v1386_v58 = vadd.f32 %v1385_v54, %v1384_v62 }
 0x65f   :  { %v1262_v28 = vmul.f32 0.5, %v1261_v9  ;;  %v1300_v0 = vmul.f32 %v1292_v59, %v1284_v44 }
 0x660   :  { %v1151_v10 = vsub.f32 1.5, %v1150_v3 }
 0x661   :  { %v1701_v55 = vpop.eup %1700  ;;  %v1263_v11 = vsub.f32 1.5, %v1262_v28  ;;  %1313 = vadd.xlane.f32.xlu2 %v1300_v0 }
 0x662   :  { %v1703_v46 = vpop.eup %1702  ;;  %v1270_v47 = vmul.f32 %v1701_v55, %v1198_v34  ;;  %v1152_v39 = vmul.f32 %v1697_v49, %v1151_v10  ;;  %vm1276_vm3 = vweird.f32 %v1701_v55  ;;  %v1721_v34 = vld [vmem:[%s2409_s6 + $0x38] sm:$0xff] }
 0x663   :  { %v1158_v18 = vmul.f32 %v1703_v46, %v1086_v16  ;;  %v1264_v53 = vmul.f32 %v1699_v50, %v1263_v11  ;;  %vm1164_vm4 = vweird.f32 %v1703_v46  ;;  %vm1277_vm6 = vmor %vm1275_vm5, %vm1276_vm3  ;;  %v1397_v16 = vsel %vm1359_vm9, %v1721_v34, 0.0 }
 0x664   :  { %v1271_v56 = vmul.f32 %v1701_v55, %v1270_v47  ;;  %v1156_v15 = vsel %vm1155_vm1, %v1697_v49, %v1152_v39  ;;  %vm1165_vm8 = vmor %vm1163_vm7, %vm1164_vm4 }
 0x665   :  { %v1159_v13 = vmul.f32 %v1703_v46, %v1158_v18  ;;  %v1268_v42 = vsel %vm1267_vm2, %v1699_v50, %v1264_v53  ;;  %v1285_v17 = vmul.f32 %v1156_v15, %v2214_v22 }
 0x666   :  { %v1272_v6 = vmul.f32 0.5, %v1271_v56  ;;  %v1293_v21 = vmul.f32 %v1712_v19, %v1268_v42 }
 0x667   :  { %v1160_v24 = vmul.f32 0.5, %v1159_v13 }
 0x668   :  { %v1273_v40 = vsub.f32 1.5, %v1272_v6  ;;  %v1301_v20 = vmul.f32 %v1293_v21, %v1285_v17 }
 0x669   :  { %v1161_v29 = vsub.f32 1.5, %v1160_v24 }
 0x66a   :  { %1315 = vadd.xlane.f32.xlu0 %v1301_v20  ;;  %v1274_v30 = vmul.f32 %v1701_v55, %v1273_v40 }
 0x66b   :  { %v1162_v32 = vmul.f32 %v1703_v46, %v1161_v29 }
 0x66c   :  { %v1278_v22 = vsel %vm1277_vm6, %v1701_v55, %v1274_v30 }
 0x66d   :  { %v1166_v8 = vsel %vm1165_vm8, %v1703_v46, %v1162_v32  ;;  %v1294_v35 = vmul.f32 %v1713_v45, %v1278_v22 }
 0x66e   :  { %v1286_v48 = vmul.f32 %v1166_v8, %v2220_v27  ;;  %v1716_v27 = vld [vmem:[%s2409_s6 + $0x10] sm:$0xff] }
 0x66f   :  { %v1387_v23 = vsel %vm1359_vm9, %v1716_v27, 0.0 }
 0x670   :  { %v1302_v14 = vmul.f32 %v1294_v35, %v1286_v48  ;;  %v1388_v61 = vadd.f32 %v1387_v23, %v1386_v58 }
 0x672   :  { %1317 = vadd.xlane.f32.xlu1 %v1302_v14  ;;  %v1390_v38 = vadd.f32 %v1389_v41, %v1388_v61 }
 0x674   :  { %v1392_v37 = vadd.f32 %v1391_v25, %v1390_v38 }
 0x676   :  { %v1394_v57 = vadd.f32 %v1393_v26, %v1392_v37 }
 0x678   :  { %v1396_v49 = vadd.f32 %v1395_v2, %v1394_v57 }
 0x67a   :  { %v1398_v4 = vadd.f32 %v1397_v16, %v1396_v49 }
 0x67c   :  { %1399 = vadd.xlane.f32.xlu0 %v1398_v4 }
 0x6ac   :  { %v1304_v50 = vpop.xlane.xlu0 %1303 }
 0x6ad   :  { %v1611_v52 = vclamps-f32 %v1304_v50, 1.0 }
 0x6af   :  { %v1335_v28 = vsub.f32 1.0, %v1611_v52 }
 0x6b1   :  { %v1343_v47 = vmul.f32 %v1335_v28, %v1335_v28 }
 0x6b3   :  { %v1351_v42 = vmul.f32 %v1714_v63, %v1343_v47 }
 0x6b4   :  { %v1306_v60 = vpop.xlane.xlu1 %1305 }
 0x6b5   :  { %v1612_v7 = vclamps-f32 %v1306_v60, 1.0  ;;  %v1360_v29 = vsel %vm1359_vm9, %v1351_v42, 0.0 }
 0x6b7   :  { %v1336_v43 = vsub.f32 1.0, %v1612_v7 }
 0x6b9   :  { %v1344_v55 = vmul.f32 %v1336_v43, %v1336_v43 }
 0x6bb   :  { %v1352_v53 = vmul.f32 %v1715_v12, %v1344_v55 }
 0x6bc   :  { %v1308_v5 = vpop.xlane.xlu2 %1307 }
 0x6bd   :  { %v1613_v9 = vclamps-f32 %v1308_v5, 1.0  ;;  %v1361_v21 = vsel %vm1359_vm9, %v1352_v53, 0.0 }
 0x6be   :  { %v1362_v8 = vadd.f32 %v1361_v21, %v1360_v29 }
 0x6bf   :  { %v1337_v0 = vsub.f32 1.0, %v1613_v9 }
 0x6c1   :  { %v1345_v39 = vmul.f32 %v1337_v0, %v1337_v0 }
 0x6c3   :  { %v1353_v17 = vmul.f32 %v1716_v27, %v1345_v39 }
 0x6c4   :  { %v1310_v33 = vpop.xlane.xlu0 %1309 }
 0x6c5   :  { %v1614_v59 = vclamps-f32 %v1310_v33, 1.0  ;;  %v1363_v30 = vsel %vm1359_vm9, %v1353_v17, 0.0 }
 0x6c6   :  { %v1364_v48 = vadd.f32 %v1363_v30, %v1362_v8 }
 0x6c7   :  { %v1338_v11 = vsub.f32 1.0, %v1614_v59 }
 0x6c9   :  { %v1346_v56 = vmul.f32 %v1338_v11, %v1338_v11 }
 0x6cb   :  { %v1354_v24 = vmul.f32 %v1717_v36, %v1346_v56 }
 0x6cc   :  { %v1312_v44 = vpop.xlane.xlu1 %1311 }
 0x6cd   :  { %v1615_v10 = vclamps-f32 %v1312_v44, 1.0  ;;  %v1365_v45 = vsel %vm1359_vm9, %v1354_v24, 0.0 }
 0x6ce   :  { %v1366_v54 = vadd.f32 %v1365_v45, %v1364_v48 }
 0x6cf   :  { %v1339_v18 = vsub.f32 1.0, %v1615_v10 }
 0x6d1   :  { %v1347_v6 = vmul.f32 %v1339_v18, %v1339_v18 }
 0x6d3   :  { %v1355_v32 = vmul.f32 %v1718_v31, %v1347_v6 }
 0x6d4   :  { %v1314_v3 = vpop.xlane.xlu2 %1313 }
 0x6d5   :  { %v1616_v46 = vclamps-f32 %v1314_v3, 1.0  ;;  %v1367_v63 = vsel %vm1359_vm9, %v1355_v32, 0.0 }
 0x6d6   :  { %v1368_v23 = vadd.f32 %v1367_v63, %v1366_v54 }
 0x6d7   :  { %v1340_v15 = vsub.f32 1.0, %v1616_v46 }
 0x6d9   :  { %v1348_v40 = vmul.f32 %v1340_v15, %v1340_v15 }
 0x6db   :  { %v1356_v35 = vmul.f32 %v1719_v51, %v1348_v40 }
 0x6dd   :  { %v1316_v13 = vpop.xlane.xlu0 %1315  ;;  %v1369_v58 = vsel %vm1359_vm9, %v1356_v35, 0.0 }
 0x6de   :  { %v1617_v19 = vclamps-f32 %v1316_v13, 1.0  ;;  %v1370_v61 = vadd.f32 %v1369_v58, %v1368_v23 }
 0x6e0   :  { %v1341_v20 = vsub.f32 1.0, %v1617_v19 }
 0x6e2   :  { %v1349_v22 = vmul.f32 %v1341_v20, %v1341_v20 }
 0x6e4   :  { %v1357_v62 = vmul.f32 %v1720_v1, %v1349_v22 }
 0x6e5   :  { %v1318_v14 = vpop.xlane.xlu1 %1317 }
 0x6e6   :  { %v1618_v12 = vclamps-f32 %v1318_v14, 1.0  ;;  %v1371_v41 = vsel %vm1359_vm9, %v1357_v62, 0.0 }
 0x6e7   :  { %v1372_v31 = vadd.f32 %v1371_v41, %v1370_v61 }
 0x6e8   :  { %v1342_v27 = vsub.f32 1.0, %v1618_v12 }
 0x6ea   :  { %v1350_v36 = vmul.f32 %v1342_v27, %v1342_v27 }
 0x6ec   :  { %v1358_v38 = vmul.f32 %v1721_v34, %v1350_v36 }
 0x6ee   :  { %v1373_v25 = vsel %vm1359_vm9, %v1358_v38, 0.0 }
 0x6ef   :  { %v1374_v37 = vadd.f32 %v1373_v25, %v1372_v31  ;;  %v1400_v51 = vpop.xlane.xlu0 %1399 }
 0x6f0   :  { %v1401_v26 = vrot.slane %v1400_v51, 4 }
 0x6f1   :  { %1375 = vadd.xlane.f32.xlu2 %v1374_v37 }
 0x6f2   :  { %v1402_v57 = vadd.f32 %v1401_v26, %v1400_v51 }
 0x6f4   :  { %v1403_v2 = vrot.slane %v1402_v57, 2 }
 0x6f6   :  { %v1404_v50 = vadd.f32 %v1403_v2, %v1402_v57 }
 0x6f8   :  { %v1405_v5 = vrot.slane %v1404_v50, 1 }
 0x6fa   :  { %v1406_v52 = vadd.f32 %v1405_v5, %v1404_v50 }
 0x764   :  { %v1376_v1 = vpop.xlane.xlu2 %1375 }
 0x765   :  { %v1377_v49 = vrot.slane %v1376_v1, 4 }
 0x767   :  { %v1378_v16 = vadd.f32 %v1377_v49, %v1376_v1 }
 0x769   :  { %v1379_v4 = vrot.slane %v1378_v16, 2 }
 0x76b   :  { %v1380_v60 = vadd.f32 %v1379_v4, %v1378_v16 }
 0x76d   :  { %v1381_v7 = vrot.slane %v1380_v60, 1 }
 0x76f   :  { %v1382_v33 = vadd.f32 %v1381_v7, %v1380_v60 }
 0x771   :  { %1655 = vpush %v1382_v33 }
 0x772   :  { %1657 = vpush %v1406_v52 }
 0x7a2   :  { %s1656_s6 = spop %1655 }
 0x7a3   :  { %s1658_s4 = spop %1657 }
 0x7a4   :  { %s1408_s21 = smax.f32 %s1738_s20, %s1658_s4 }
 0x7a5   :  { %v1409_v34 = vstv %s1408_s21 }
 0x7a6   :  { %1704 = vrcp.f32 %v1409_v34  ;;  %v1421_v59 = vand.u32 2147483648, %v1409_v34  ;;  %v1419_v28 = vand.u32 2147483647, %v1409_v34  ;;  %vm1415_vm11 = vweird.f32 %v1409_v34 }
 0x7a8   :  { %v1422_v10 = vor.u32 1.1754944e-38, %v1421_v59  ;;  %vm1420_vm13 = vcmp.eq.f32.partialorder %v1419_v28, 8.507059e+37 }
 0x7ac   :  { %v1705_v9 = vpop.eup %1704 }
 0x7ad   :  { %v1411_v44 = vmul.f32 %v1705_v9, %v1409_v34  ;;  %vm1416_vm10 = vweird.f32 %v1705_v9 }
 0x7ae   :  { %vm1417_vm12 = vmor %vm1415_vm11, %vm1416_vm10 }
 0x7af   :  { %v1412_v43 = vsub.f32 1.0, %v1411_v44 }
 0x7b1   :  { %v1413_v3 = vmul.f32 %v1705_v9, %v1412_v43 }
 0x7b3   :  { %v1414_v0 = vadd.f32 %v1705_v9, %v1413_v3 }
 0x7b5   :  { %v1418_v55 = vsel %vm1417_vm12, %v1705_v9, %v1414_v0 }
 0x7b6   :  { %v1423_v11 = vsel %vm1420_vm13, %v1422_v10, %v1418_v55 }
 0x7b7   :  { %1659 = vpush %v1423_v11 }
 0x7e8   :  { %s1660_s5 = spop %1659 }
 0x7e9   :  { %s1425_s11 = smul.f32 %s1660_s5, %s1656_s6 }
 0x7eb   :  { %1427 = sst [smem:[#allocation2]] %s1425_s11 }
 0x7ec   :  { %1436 = dma.smem_to_hbm %s1739_s12, 16, %s1434_s23, [#allocation3]  }
 0x7ed   :  { %1734 = dma.done.wait [#allocation3], 16  }
 0x7ee   :  { %1735 = vsyncadd [#allocation3], 4294967280 }
 0x7ef   :  { %1441 = sfence }
 0x7f0   :  { %1442 = vsyncpa [#allocation3], 1 }

</bundles_post_ra>
